<compile_context>
chip_gen: v7x
topology: tpu7x:2x2x1
jax: 0.10.0
libtpu: 0.0.40
codegen_flags: <defaults>
</compile_context>

<pallas_src>
import functools

import jax
import jax.numpy as jnp
from jax.experimental import pallas as pl
from jax.experimental.pallas import tpu as pltpu


def attention_kernel(x_ref, wqkv_ref, wo_ref, bo_ref, o_ref, *,
                     heads, dim_head, bt, seq, dq, inner, tkv):
    """One grid step: a (bt, N, Dq) activation slab, all heads, all KV tiles."""
    m_rows = bt * seq
    # Leading-dim merge only (lane dim untouched) -> free when seq % 16 == 0.
    x2d = x_ref[...].reshape(m_rows, dq)                              # (M, Dq) bf16

    # Fused QKV projection: ONE matmul of output width 3*inner instead of
    # 3*heads matmuls of width dim_head. Attention scale is pre-folded into
    # the Q columns by the wrapper (zero in-kernel cost).
    qkv = jnp.dot(x2d, wqkv_ref[...],
                  preferred_element_type=jnp.float32)                 # (M, 3*inner) f32

    n_kv = seq // tkv
    out_acc = jnp.zeros((m_rows, dq), jnp.float32)

    for h in range(heads):
        c0 = h * dim_head
        qh = qkv[:, c0:c0 + dim_head]
        kh = qkv[:, inner + c0:inner + c0 + dim_head]
        vh = qkv[:, 2 * inner + c0:2 * inner + c0 + dim_head]

        # Leading-dim splits (seq % 8 == 0 keeps them layout-preserving).
        qh = qh.reshape(bt, seq, dim_head).astype(jnp.bfloat16)
        kh = kh.reshape(bt, seq, dim_head).astype(jnp.bfloat16)
        vh = vh.reshape(bt, seq, dim_head).astype(jnp.bfloat16)

        # Flash-style online softmax over KV tiles: only a (bt, N, tkv) score
        # block is live per head (single tile when seq <= tkv).
        m_i = jnp.full((bt, seq, 1), -jnp.inf, jnp.float32)
        l_i = jnp.zeros((bt, seq, 1), jnp.float32)
        acc = jnp.zeros((bt, seq, dim_head), jnp.float32)
        for t in range(n_kv):
            k_t = kh[:, t * tkv:(t + 1) * tkv, :]
            v_t = vh[:, t * tkv:(t + 1) * tkv, :]
            # Batched 'NT' matmul on the MXU; no explicit K transpose.
            sim = jnp.einsum('bqd,bkd->bqk', qh, k_t,
                             preferred_element_type=jnp.float32)      # (bt,N,tkv) f32
            m_new = jnp.maximum(m_i, jnp.max(sim, axis=-1, keepdims=True))
            alpha = jnp.exp(m_i - m_new)                              # f32 rescale
            # exp in bf16 on the EUP; max-subtract + l_i accumulation stay f32.
            p = jnp.exp((sim - m_new).astype(jnp.bfloat16))           # (bt,N,tkv) bf16
            l_i = alpha * l_i + jnp.sum(p.astype(jnp.float32), axis=-1, keepdims=True)
            acc = alpha * acc + jnp.einsum('bqk,bkd->bqd', p, v_t,
                                           preferred_element_type=jnp.float32)
            m_i = m_new

        # Deferred softmax normalization (EUP approx reciprocal, final step only).
        oh = acc * pl.reciprocal(l_i, approx=True)                    # (bt,N,Dh) f32

        # Output projection accumulated per head: no head concat is ever built.
        out_acc = out_acc + jnp.dot(
            oh.reshape(m_rows, dim_head).astype(jnp.bfloat16), wo_ref[h],
            preferred_element_type=jnp.float32)                       # (M, Dq)

    out = out_acc + bo_ref[...]               # to_out bias; Dropout(p=0.0) is identity
    o_ref[...] = out.reshape(bt, seq, dq).astype(o_ref.dtype)


def _vmem_limit_bytes():
    """Generation-aware scoped-VMEM limit: ~75% of physical VMEM, capped at 96 MiB
    (=> 96 MiB on v5e/v6e's 128 MiB, 48 MiB on v7x's 64 MiB)."""
    try:
        phys = int(pltpu.get_tpu_info().vmem_capacity_bytes)
    except Exception:                      # conservative (v7x-sized) fallback
        phys = 64 * 1024 * 1024
    return max(32 * 1024 * 1024, min(phys * 3 // 4, 96 * 1024 * 1024))


def _pick_kv_tile(n, target=512):
    """Largest divisor of n that is <= target (no tiling if none >= 128 exists)."""
    if n <= target:
        return n
    for t in range(target, 127, -1):
        if n % t == 0:
            return t
    return n


def _pick_batch_tile(batch, seq, dq, inner, dim_head, tkv, budget_bytes):
    """Largest divisor of `batch` whose per-step VMEM footprint fits the budget,
    capped so the grid has >= 2 steps (keeps both v7x TensorCores busy)."""
    per_b = seq * (
        2 * 2 * dq                        # bf16 x tile, double-buffered
        + 2 * 4 * dq                      # f32 out tile, double-buffered
        + 4 * 3 * inner                   # f32 fused QKV activations
        + 4 * dq                          # f32 output accumulator
        + 2 * (10 * dim_head + 6 * tkv)   # ~2 live heads of q/k/v/acc + sim/p tiles
    )
    per_b = int(per_b * 1.5)              # headroom for relayouts / copies
    cap = max(1, min(batch, budget_bytes // max(per_b, 1)))
    if batch >= 2:
        cap = min(cap, max(1, batch // 2))   # guarantee >= 2 grid steps
    for bt in range(cap, 0, -1):
        if batch % bt == 0:
            return bt
    return 1


def attention_forward(x, wq, wkv, wo, bo, *, heads, dim_head):
    """x: (B, N, Dq) f32. Matches Attention.forward with default optional args."""
    B, N, Dq = x.shape
    inner = heads * dim_head
    assert wq.shape == (Dq, inner)
    assert wkv.shape == (Dq, 2 * inner)
    assert wo.shape == (inner, Dq)
    scale = float(dim_head) ** (-0.5)

    # Fused QKV weight slab [Q*scale | K | V] (bf16), per-head-major output proj.
    wqkv = jnp.concatenate(
        [wq * scale, wkv[:, :inner], wkv[:, inner:]], axis=1).astype(jnp.bfloat16)
    wo_h = wo.reshape(heads, dim_head, Dq).astype(jnp.bfloat16)
    bo2 = bo.reshape(1, Dq).astype(jnp.float32)
    xb = x.astype(jnp.bfloat16)

    vmem_limit = _vmem_limit_bytes()
    weight_bytes = wqkv.size * 2 + wo_h.size * 2 + bo2.size * 4
    tkv = _pick_kv_tile(N)
    budget = max(2 * 1024 * 1024, vmem_limit - 2 * weight_bytes - 2 * 1024 * 1024)
    bt = _pick_batch_tile(B, N, Dq, inner, dim_head, tkv, budget)
    grid = (B // bt,)

    kernel = functools.partial(attention_kernel, heads=heads, dim_head=dim_head,
                               bt=bt, seq=N, dq=Dq, inner=inner, tkv=tkv)

    cost = pl.CostEstimate(
        flops=int(2 * B * N * Dq * 3 * inner            # fused QKV projection
                  + 4 * B * heads * N * N * dim_head    # scores + PV
                  + 2 * B * N * inner * Dq),            # output projection
        transcendentals=int(B * heads * N * N),
        bytes_accessed=int(B * N * Dq * (2 + 4) + weight_bytes))

    def build(advanced):
        # advanced=True : single-buffered constant-index weights + cost estimate.
        # advanced=False: conservative config (default double-buffering).
        kw = dict(pipeline_mode=pl.Buffered(1)) if advanced else {}
        extra = dict(cost_estimate=cost) if advanced else {}
        return pl.pallas_call(
            kernel,
            out_shape=jax.ShapeDtypeStruct((B, N, Dq), x.dtype),
            grid_spec=pltpu.PrefetchScalarGridSpec(
                num_scalar_prefetch=0,
                grid=grid,
                in_specs=[
                    pl.BlockSpec((bt, N, Dq), lambda b: (b, 0, 0)),
                    pl.BlockSpec((Dq, 3 * inner), lambda b: (0, 0), **kw),
                    pl.BlockSpec((heads, dim_head, Dq), lambda b: (0, 0, 0), **kw),
                    pl.BlockSpec((1, Dq), lambda b: (0, 0), **kw),
                ],
                out_specs=pl.BlockSpec((bt, N, Dq), lambda b: (b, 0, 0)),
            ),
            compiler_params=pltpu.CompilerParams(
                dimension_semantics=("parallel",),
                vmem_limit_bytes=vmem_limit),
            **extra,
        )

    last_err = None
    for advanced in (True, False):
        try:
            out = build(advanced)(xb, wqkv, wo_h, bo2)
            return jax.block_until_ready(out)
        except Exception as err:   # fall back to the conservative configuration
            last_err = err
    raise last_err


def attention_reference(x, wq, wkv, wo, bo, *, heads, dim_head):
    """Pure-JAX f32 reference mirroring the PyTorch forward (default args)."""
    B, N, Dq = x.shape
    inner = heads * dim_head
    scale = float(dim_head) ** (-0.5)
    q = x @ wq
    kv = x @ wkv
    k, v = kv[..., :inner], kv[..., inner:]

    def split_heads(t):  # (B, N, H*Dh) -> (B*H, N, Dh)
        t = t.reshape(B, N, heads, dim_head).transpose(0, 2, 1, 3)
        return t.reshape(B * heads, N, dim_head)

    q, k, v = map(split_heads, (q, k, v))
    sim = jnp.einsum('bid,bjd->bij', q, k) * scale
    attn = jax.nn.softmax(sim, axis=-1)
    out = jnp.einsum('bij,bjd->bid', attn, v)
    out = out.reshape(B, heads, N, dim_head).transpose(0, 2, 1, 3).reshape(B, N, inner)
    return out @ wo + bo[None, None, :]


if __name__ == "__main__":
    # Small shapes consistent with the module; N is a multiple of the bf16
    # sublane pack (16) so in-kernel reshapes are layout-preserving.
    B, N = 2, 16          # batch, sequence length
    query_dim = 32
    heads, dim_head = 2, 16
    inner = heads * dim_head

    key = jax.random.PRNGKey(0)
    kx, kq, kkv, ko, kb = jax.random.split(key, 5)

    x = jax.random.normal(kx, (B, N, query_dim), dtype=jnp.float32)
    # Deterministic synthetic parameters (stored as (in_features, out_features)).
    wq = jax.random.normal(kq, (query_dim, inner), dtype=jnp.float32) * 0.05
    wkv = jax.random.normal(kkv, (query_dim, 2 * inner), dtype=jnp.float32) * 0.05
    wo = jax.random.normal(ko, (inner, query_dim), dtype=jnp.float32) * 0.05
    bo = jax.random.normal(kb, (query_dim,), dtype=jnp.float32) * 0.05

    out = attention_forward(x, wq, wkv, wo, bo, heads=heads, dim_head=dim_head)
    jax.block_until_ready(out)

    ref = attention_reference(x, wq, wkv, wo, bo, heads=heads, dim_head=dim_head)
    assert out.shape == (B, N, query_dim)
    # bf16 matmul inputs, bf16 exp and approx reciprocal -> loosened tolerance.
    assert jnp.allclose(out, ref, atol=2e-2, rtol=2e-2), "mismatch vs reference"

    print("KERNEL_OK")
</pallas_src>

<mosaic_0001>
module attributes {stable_mosaic.version = 11 : i64} {
  func.func @attention_kernel(%arg0: i32, %arg1: memref<1x16x32xbf16, #tpu.memory_space<vmem>>, %arg2: memref<32x96xbf16, #tpu.memory_space<vmem>>, %arg3: memref<2x16x32xbf16, #tpu.memory_space<vmem>>, %arg4: memref<1x32xf32, #tpu.memory_space<vmem>>, %arg5: memref<1x16x32xf32, #tpu.memory_space<vmem>>) attributes {dimension_semantics = [#tpu.dimension_semantics<parallel>], iteration_bounds = array<i64: 2>, scalar_prefetch = 0 : i64, scratch_operands = 0 : i64, tpu.core_type = #tpu.core_type<tc>, window_params = [{transform_indices = @transform_0, window_bounds = array<i64: 1, 16, 32>}, {pipeline_mode = #tpu.pipeline_mode<synchronous>, transform_indices = @transform_1, window_bounds = array<i64: 32, 96>}, {pipeline_mode = #tpu.pipeline_mode<synchronous>, transform_indices = @transform_2, window_bounds = array<i64: 2, 16, 32>}, {pipeline_mode = #tpu.pipeline_mode<synchronous>, transform_indices = @transform_3, window_bounds = array<i64: 1, 32>}, {transform_indices = @transform_4, window_bounds = array<i64: 1, 16, 32>}]} {
    %c0 = arith.constant 0 : index
    %c0_0 = arith.constant 0 : index
    %c0_1 = arith.constant 0 : index
    %0 = vector.load %arg1[%c0, %c0_0, %c0_1] : memref<1x16x32xbf16, #tpu.memory_space<vmem>>, vector<1x16x32xbf16>
    %1 = vector.shape_cast %0 : vector<1x16x32xbf16> to vector<16x32xbf16>
    %c0_2 = arith.constant 0 : index
    %c0_3 = arith.constant 0 : index
    %2 = vector.load %arg2[%c0_2, %c0_3] : memref<32x96xbf16, #tpu.memory_space<vmem>>, vector<32x96xbf16>
    %cst = arith.constant dense<0.000000e+00> : vector<16x96xf32>
    %3 = tpu.matmul %1, %2, %cst {dimension_numbers = #tpu.dot_dimension_numbers<[1], [0], [0], [1], [0, 0, 1, 1], [], []>} : vector<16x32xbf16>, vector<32x96xbf16>, vector<16x96xf32> -> vector<16x96xf32>
    %cst_4 = arith.constant 0.000000e+00 : f32
    %4 = vector.broadcast %cst_4 : f32 to vector<16x32xf32>
    %5 = vector.extract_strided_slice %3 {offsets = [0, 0], sizes = [16, 16], strides = [1, 1]} : vector<16x96xf32> to vector<16x16xf32>
    %6 = vector.extract_strided_slice %3 {offsets = [0, 32], sizes = [16, 16], strides = [1, 1]} : vector<16x96xf32> to vector<16x16xf32>
    %7 = vector.extract_strided_slice %3 {offsets = [0, 64], sizes = [16, 16], strides = [1, 1]} : vector<16x96xf32> to vector<16x16xf32>
    %8 = vector.shape_cast %5 : vector<16x16xf32> to vector<1x16x16xf32>
    %9 = arith.truncf %8 : vector<1x16x16xf32> to vector<1x16x16xbf16>
    %10 = vector.shape_cast %6 : vector<16x16xf32> to vector<1x16x16xf32>
    %11 = arith.truncf %10 : vector<1x16x16xf32> to vector<1x16x16xbf16>
    %12 = vector.shape_cast %7 : vector<16x16xf32> to vector<1x16x16xf32>
    %13 = arith.truncf %12 : vector<1x16x16xf32> to vector<1x16x16xbf16>
    %cst_5 = arith.constant 0xFF800000 : f32
    %14 = vector.broadcast %cst_5 : f32 to vector<1x16x1xf32>
    %cst_6 = arith.constant 0.000000e+00 : f32
    %15 = vector.broadcast %cst_6 : f32 to vector<1x16x1xf32>
    %cst_7 = arith.constant 0.000000e+00 : f32
    %16 = vector.broadcast %cst_7 : f32 to vector<1x16x16xf32>
    "tpu.trace_start"() <{level = 10 : i32, message = "bqd,bkd->bqk"}> : () -> ()
    %cst_8 = arith.constant dense<0.000000e+00> : vector<1x16x16xf32>
    %17 = tpu.matmul %9, %11, %cst_8 {dimension_numbers = #tpu.dot_dimension_numbers<[2], [2], [1], [1], [0, 0, 0, 1, 1, 1], [0], [0]>} : vector<1x16x16xbf16>, vector<1x16x16xbf16>, vector<1x16x16xf32> -> vector<1x16x16xf32>
    "tpu.trace_stop"() : () -> ()
    %cst_9 = arith.constant dense<0xFF800000> : vector<1x16xf32>
    %18 = vector.multi_reduction <maximumf>, %17, %cst_9 [2] : vector<1x16x16xf32> to vector<1x16xf32>
    %19 = vector.shape_cast %18 : vector<1x16xf32> to vector<1x16x1xf32>
    %20 = arith.maximumf %14, %19 : vector<1x16x1xf32>
    %21 = arith.subf %14, %20 : vector<1x16x1xf32>
    %22 = math.exp %21 : vector<1x16x1xf32>
    %23 = vector.broadcast %20 : vector<1x16x1xf32> to vector<1x16x16xf32>
    %24 = arith.subf %17, %23 : vector<1x16x16xf32>
    %25 = arith.truncf %24 : vector<1x16x16xf32> to vector<1x16x16xbf16>
    %26 = math.exp %25 : vector<1x16x16xbf16>
    %27 = arith.mulf %22, %15 : vector<1x16x1xf32>
    %28 = arith.extf %26 : vector<1x16x16xbf16> to vector<1x16x16xf32>
    %cst_10 = arith.constant dense<0.000000e+00> : vector<1x16xf32>
    %29 = vector.multi_reduction <add>, %28, %cst_10 [2] : vector<1x16x16xf32> to vector<1x16xf32>
    %30 = vector.shape_cast %29 : vector<1x16xf32> to vector<1x16x1xf32>
    %31 = arith.addf %27, %30 : vector<1x16x1xf32>
    %32 = vector.broadcast %22 : vector<1x16x1xf32> to vector<1x16x16xf32>
    %33 = arith.mulf %32, %16 : vector<1x16x16xf32>
    "tpu.trace_start"() <{level = 10 : i32, message = "bqk,bkd->bqd"}> : () -> ()
    %cst_11 = arith.constant dense<0.000000e+00> : vector<1x16x16xf32>
    %34 = tpu.matmul %26, %13, %cst_11 {dimension_numbers = #tpu.dot_dimension_numbers<[2], [1], [1], [2], [0, 0, 0, 1, 1, 2], [0], [0]>} : vector<1x16x16xbf16>, vector<1x16x16xbf16>, vector<1x16x16xf32> -> vector<1x16x16xf32>
    "tpu.trace_stop"() : () -> ()
    %35 = arith.addf %33, %34 : vector<1x16x16xf32>
    %36 = tpu.reciprocal %31 {approx = true} : vector<1x16x1xf32> -> vector<1x16x1xf32>
    %37 = vector.broadcast %36 : vector<1x16x1xf32> to vector<1x16x16xf32>
    %38 = arith.mulf %35, %37 : vector<1x16x16xf32>
    %39 = vector.shape_cast %38 : vector<1x16x16xf32> to vector<16x16xf32>
    %40 = arith.truncf %39 : vector<16x16xf32> to vector<16x16xbf16>
    %c0_12 = arith.constant 0 : index
    %c0_13 = arith.constant 0 : index
    %c0_14 = arith.constant 0 : index
    %41 = vector.load %arg3[%c0_12, %c0_13, %c0_14] : memref<2x16x32xbf16, #tpu.memory_space<vmem>>, vector<1x16x32xbf16>
    %42 = vector.shape_cast %41 : vector<1x16x32xbf16> to vector<16x32xbf16>
    %cst_15 = arith.constant dense<0.000000e+00> : vector<16x32xf32>
    %43 = tpu.matmul %40, %42, %cst_15 {dimension_numbers = #tpu.dot_dimension_numbers<[1], [0], [0], [1], [0, 0, 1, 1], [], []>} : vector<16x16xbf16>, vector<16x32xbf16>, vector<16x32xf32> -> vector<16x32xf32>
    %44 = arith.addf %4, %43 : vector<16x32xf32>
    %45 = vector.extract_strided_slice %3 {offsets = [0, 16], sizes = [16, 16], strides = [1, 1]} : vector<16x96xf32> to vector<16x16xf32>
    %46 = vector.extract_strided_slice %3 {offsets = [0, 48], sizes = [16, 16], strides = [1, 1]} : vector<16x96xf32> to vector<16x16xf32>
    %47 = vector.extract_strided_slice %3 {offsets = [0, 80], sizes = [16, 16], strides = [1, 1]} : vector<16x96xf32> to vector<16x16xf32>
    %48 = vector.shape_cast %45 : vector<16x16xf32> to vector<1x16x16xf32>
    %49 = arith.truncf %48 : vector<1x16x16xf32> to vector<1x16x16xbf16>
    %50 = vector.shape_cast %46 : vector<16x16xf32> to vector<1x16x16xf32>
    %51 = arith.truncf %50 : vector<1x16x16xf32> to vector<1x16x16xbf16>
    %52 = vector.shape_cast %47 : vector<16x16xf32> to vector<1x16x16xf32>
    %53 = arith.truncf %52 : vector<1x16x16xf32> to vector<1x16x16xbf16>
    %cst_16 = arith.constant 0xFF800000 : f32
    %54 = vector.broadcast %cst_16 : f32 to vector<1x16x1xf32>
    %cst_17 = arith.constant 0.000000e+00 : f32
    %55 = vector.broadcast %cst_17 : f32 to vector<1x16x1xf32>
    %cst_18 = arith.constant 0.000000e+00 : f32
    %56 = vector.broadcast %cst_18 : f32 to vector<1x16x16xf32>
    "tpu.trace_start"() <{level = 10 : i32, message = "bqd,bkd->bqk"}> : () -> ()
    %cst_19 = arith.constant dense<0.000000e+00> : vector<1x16x16xf32>
    %57 = tpu.matmul %49, %51, %cst_19 {dimension_numbers = #tpu.dot_dimension_numbers<[2], [2], [1], [1], [0, 0, 0, 1, 1, 1], [0], [0]>} : vector<1x16x16xbf16>, vector<1x16x16xbf16>, vector<1x16x16xf32> -> vector<1x16x16xf32>
    "tpu.trace_stop"() : () -> ()
    %cst_20 = arith.constant dense<0xFF800000> : vector<1x16xf32>
    %58 = vector.multi_reduction <maximumf>, %57, %cst_20 [2] : vector<1x16x16xf32> to vector<1x16xf32>
    %59 = vector.shape_cast %58 : vector<1x16xf32> to vector<1x16x1xf32>
    %60 = arith.maximumf %54, %59 : vector<1x16x1xf32>
    %61 = arith.subf %54, %60 : vector<1x16x1xf32>
    %62 = math.exp %61 : vector<1x16x1xf32>
    %63 = vector.broadcast %60 : vector<1x16x1xf32> to vector<1x16x16xf32>
    %64 = arith.subf %57, %63 : vector<1x16x16xf32>
    %65 = arith.truncf %64 : vector<1x16x16xf32> to vector<1x16x16xbf16>
    %66 = math.exp %65 : vector<1x16x16xbf16>
    %67 = arith.mulf %62, %55 : vector<1x16x1xf32>
    %68 = arith.extf %66 : vector<1x16x16xbf16> to vector<1x16x16xf32>
    %cst_21 = arith.constant dense<0.000000e+00> : vector<1x16xf32>
    %69 = vector.multi_reduction <add>, %68, %cst_21 [2] : vector<1x16x16xf32> to vector<1x16xf32>
    %70 = vector.shape_cast %69 : vector<1x16xf32> to vector<1x16x1xf32>
    %71 = arith.addf %67, %70 : vector<1x16x1xf32>
    %72 = vector.broadcast %62 : vector<1x16x1xf32> to vector<1x16x16xf32>
    %73 = arith.mulf %72, %56 : vector<1x16x16xf32>
    "tpu.trace_start"() <{level = 10 : i32, message = "bqk,bkd->bqd"}> : () -> ()
    %cst_22 = arith.constant dense<0.000000e+00> : vector<1x16x16xf32>
    %74 = tpu.matmul %66, %53, %cst_22 {dimension_numbers = #tpu.dot_dimension_numbers<[2], [1], [1], [2], [0, 0, 0, 1, 1, 2], [0], [0]>} : vector<1x16x16xbf16>, vector<1x16x16xbf16>, vector<1x16x16xf32> -> vector<1x16x16xf32>
    "tpu.trace_stop"() : () -> ()
    %75 = arith.addf %73, %74 : vector<1x16x16xf32>
    %76 = tpu.reciprocal %71 {approx = true} : vector<1x16x1xf32> -> vector<1x16x1xf32>
    %77 = vector.broadcast %76 : vector<1x16x1xf32> to vector<1x16x16xf32>
    %78 = arith.mulf %75, %77 : vector<1x16x16xf32>
    %79 = vector.shape_cast %78 : vector<1x16x16xf32> to vector<16x16xf32>
    %80 = arith.truncf %79 : vector<16x16xf32> to vector<16x16xbf16>
    %c1 = arith.constant 1 : index
    %c0_23 = arith.constant 0 : index
    %c0_24 = arith.constant 0 : index
    %81 = vector.load %arg3[%c1, %c0_23, %c0_24] : memref<2x16x32xbf16, #tpu.memory_space<vmem>>, vector<1x16x32xbf16>
    %82 = vector.shape_cast %81 : vector<1x16x32xbf16> to vector<16x32xbf16>
    %cst_25 = arith.constant dense<0.000000e+00> : vector<16x32xf32>
    %83 = tpu.matmul %80, %82, %cst_25 {dimension_numbers = #tpu.dot_dimension_numbers<[1], [0], [0], [1], [0, 0, 1, 1], [], []>} : vector<16x16xbf16>, vector<16x32xbf16>, vector<16x32xf32> -> vector<16x32xf32>
    %84 = arith.addf %44, %83 : vector<16x32xf32>
    %c0_26 = arith.constant 0 : index
    %c0_27 = arith.constant 0 : index
    %85 = vector.load %arg4[%c0_26, %c0_27] : memref<1x32xf32, #tpu.memory_space<vmem>>, vector<1x32xf32>
    %86 = vector.broadcast %85 : vector<1x32xf32> to vector<16x32xf32>
    %87 = arith.addf %84, %86 : vector<16x32xf32>
    %88 = vector.shape_cast %87 : vector<16x32xf32> to vector<1x16x32xf32>
    %c0_28 = arith.constant 0 : index
    %c0_29 = arith.constant 0 : index
    %c0_30 = arith.constant 0 : index
    %89 = vector.load %arg5[%c0_28, %c0_29, %c0_30] : memref<1x16x32xf32, #tpu.memory_space<vmem>>, vector<1x16x32xf32>
    tpu.vector_store %arg5[%c0_28, %c0_29, %c0_30], %88 {strides = array<i32>} : memref<1x16x32xf32, #tpu.memory_space<vmem>>, vector<1x16x32xf32>,
    return
  }
  func.func @transform_0(%arg0: i32) -> (i32, i32, i32) {
    %c0_i32 = arith.constant 0 : i32
    %c0_i32_0 = arith.constant 0 : i32
    %c0_i32_1 = arith.constant 0 : i32
    return %arg0, %c0_i32, %c0_i32_0 : i32, i32, i32
  }
  func.func @transform_1(%arg0: i32) -> (i32, i32) {
    %c0_i32 = arith.constant 0 : i32
    %c0_i32_0 = arith.constant 0 : i32
    %c0_i32_1 = arith.constant 0 : i32
    return %c0_i32, %c0_i32_0 : i32, i32
  }
  func.func @transform_2(%arg0: i32) -> (i32, i32, i32) {
    %c0_i32 = arith.constant 0 : i32
    %c0_i32_0 = arith.constant 0 : i32
    %c0_i32_1 = arith.constant 0 : i32
    %c0_i32_2 = arith.constant 0 : i32
    return %c0_i32, %c0_i32_0, %c0_i32_1 : i32, i32, i32
  }
  func.func @transform_3(%arg0: i32) -> (i32, i32) {
    %c0_i32 = arith.constant 0 : i32
    %c0_i32_0 = arith.constant 0 : i32
    %c0_i32_1 = arith.constant 0 : i32
    return %c0_i32, %c0_i32_0 : i32, i32
  }
  func.func @transform_4(%arg0: i32) -> (i32, i32, i32) {
    %c0_i32 = arith.constant 0 : i32
    %c0_i32_0 = arith.constant 0 : i32
    %c0_i32_1 = arith.constant 0 : i32
    return %arg0, %c0_i32, %c0_i32_0 : i32, i32, i32
  }
}

module attributes {stable_mosaic.version = 11 : i64} {
  func.func @attention_kernel(%arg0: i32, %arg1: memref<1x16x32xbf16, #tpu.memory_space<vmem>>, %arg2: memref<32x96xbf16, #tpu.memory_space<vmem>>, %arg3: memref<2x16x32xbf16, #tpu.memory_space<vmem>>, %arg4: memref<1x32xf32, #tpu.memory_space<vmem>>, %arg5: memref<1x16x32xf32, #tpu.memory_space<vmem>>) attributes {dimension_semantics = [#tpu.dimension_semantics<parallel>], iteration_bounds = array<i64: 2>, scalar_prefetch = 0 : i64, scratch_operands = 0 : i64, tpu.core_type = #tpu.core_type<tc>, window_params = [{transform_indices = @transform_0, window_bounds = array<i64: 1, 16, 32>}, {pipeline_mode = #tpu.pipeline_mode<synchronous>, transform_indices = @transform_1, window_bounds = array<i64: 32, 96>}, {pipeline_mode = #tpu.pipeline_mode<synchronous>, transform_indices = @transform_2, window_bounds = array<i64: 2, 16, 32>}, {pipeline_mode = #tpu.pipeline_mode<synchronous>, transform_indices = @transform_3, window_bounds = array<i64: 1, 32>}, {transform_indices = @transform_4, window_bounds = array<i64: 1, 16, 32>}]} {
    %c0 = arith.constant 0 : index
    %c0_0 = arith.constant 0 : index
    %c0_1 = arith.constant 0 : index
    %0 = vector.load %arg1[%c0, %c0_0, %c0_1] : memref<1x16x32xbf16, #tpu.memory_space<vmem>>, vector<1x16x32xbf16>
    %1 = vector.shape_cast %0 : vector<1x16x32xbf16> to vector<16x32xbf16>
    %c0_2 = arith.constant 0 : index
    %c0_3 = arith.constant 0 : index
    %2 = vector.load %arg2[%c0_2, %c0_3] : memref<32x96xbf16, #tpu.memory_space<vmem>>, vector<32x96xbf16>
    %cst = arith.constant dense<0.000000e+00> : vector<16x96xf32>
    %3 = tpu.matmul %1, %2, %cst {dimension_numbers = #tpu.dot_dimension_numbers<[1], [0], [0], [1], [0, 0, 1, 1], [], []>} : vector<16x32xbf16>, vector<32x96xbf16>, vector<16x96xf32> -> vector<16x96xf32>
    %cst_4 = arith.constant 0.000000e+00 : f32
    %4 = vector.broadcast %cst_4 : f32 to vector<16x32xf32>
    %5 = vector.extract_strided_slice %3 {offsets = [0, 0], sizes = [16, 16], strides = [1, 1]} : vector<16x96xf32> to vector<16x16xf32>
    %6 = vector.extract_strided_slice %3 {offsets = [0, 32], sizes = [16, 16], strides = [1, 1]} : vector<16x96xf32> to vector<16x16xf32>
    %7 = vector.extract_strided_slice %3 {offsets = [0, 64], sizes = [16, 16], strides = [1, 1]} : vector<16x96xf32> to vector<16x16xf32>
    %8 = vector.shape_cast %5 : vector<16x16xf32> to vector<1x16x16xf32>
    %9 = arith.truncf %8 : vector<1x16x16xf32> to vector<1x16x16xbf16>
    %10 = vector.shape_cast %6 : vector<16x16xf32> to vector<1x16x16xf32>
    %11 = arith.truncf %10 : vector<1x16x16xf32> to vector<1x16x16xbf16>
    %12 = vector.shape_cast %7 : vector<16x16xf32> to vector<1x16x16xf32>
    %13 = arith.truncf %12 : vector<1x16x16xf32> to vector<1x16x16xbf16>
    %cst_5 = arith.constant 0xFF800000 : f32
    %14 = vector.broadcast %cst_5 : f32 to vector<1x16x1xf32>
    %cst_6 = arith.constant 0.000000e+00 : f32
    %15 = vector.broadcast %cst_6 : f32 to vector<1x16x1xf32>
    %cst_7 = arith.constant 0.000000e+00 : f32
    %16 = vector.broadcast %cst_7 : f32 to vector<1x16x16xf32>
    "tpu.trace_start"() <{level = 10 : i32, message = "bqd,bkd->bqk"}> : () -> ()
    %cst_8 = arith.constant dense<0.000000e+00> : vector<1x16x16xf32>
    %17 = tpu.matmul %9, %11, %cst_8 {dimension_numbers = #tpu.dot_dimension_numbers<[2], [2], [1], [1], [0, 0, 0, 1, 1, 1], [0], [0]>} : vector<1x16x16xbf16>, vector<1x16x16xbf16>, vector<1x16x16xf32> -> vector<1x16x16xf32>
    "tpu.trace_stop"() : () -> ()
    %cst_9 = arith.constant dense<0xFF800000> : vector<1x16xf32>
    %18 = vector.multi_reduction <maximumf>, %17, %cst_9 [2] : vector<1x16x16xf32> to vector<1x16xf32>
    %19 = vector.shape_cast %18 : vector<1x16xf32> to vector<1x16x1xf32>
    %20 = arith.maximumf %14, %19 : vector<1x16x1xf32>
    %21 = arith.subf %14, %20 : vector<1x16x1xf32>
    %22 = math.exp %21 : vector<1x16x1xf32>
    %23 = vector.broadcast %20 : vector<1x16x1xf32> to vector<1x16x16xf32>
    %24 = arith.subf %17, %23 : vector<1x16x16xf32>
    %25 = arith.truncf %24 : vector<1x16x16xf32> to vector<1x16x16xbf16>
    %26 = math.exp %25 : vector<1x16x16xbf16>
    %27 = arith.mulf %22, %15 : vector<1x16x1xf32>
    %28 = arith.extf %26 : vector<1x16x16xbf16> to vector<1x16x16xf32>
    %cst_10 = arith.constant dense<0.000000e+00> : vector<1x16xf32>
    %29 = vector.multi_reduction <add>, %28, %cst_10 [2] : vector<1x16x16xf32> to vector<1x16xf32>
    %30 = vector.shape_cast %29 : vector<1x16xf32> to vector<1x16x1xf32>
    %31 = arith.addf %27, %30 : vector<1x16x1xf32>
    %32 = vector.broadcast %22 : vector<1x16x1xf32> to vector<1x16x16xf32>
    %33 = arith.mulf %32, %16 : vector<1x16x16xf32>
    "tpu.trace_start"() <{level = 10 : i32, message = "bqk,bkd->bqd"}> : () -> ()
    %cst_11 = arith.constant dense<0.000000e+00> : vector<1x16x16xf32>
    %34 = tpu.matmul %26, %13, %cst_11 {dimension_numbers = #tpu.dot_dimension_numbers<[2], [1], [1], [2], [0, 0, 0, 1, 1, 2], [0], [0]>} : vector<1x16x16xbf16>, vector<1x16x16xbf16>, vector<1x16x16xf32> -> vector<1x16x16xf32>
    "tpu.trace_stop"() : () -> ()
    %35 = arith.addf %33, %34 : vector<1x16x16xf32>
    %36 = tpu.reciprocal %31 {approx = true} : vector<1x16x1xf32> -> vector<1x16x1xf32>
    %37 = vector.broadcast %36 : vector<1x16x1xf32> to vector<1x16x16xf32>
    %38 = arith.mulf %35, %37 : vector<1x16x16xf32>
    %39 = vector.shape_cast %38 : vector<1x16x16xf32> to vector<16x16xf32>
    %40 = arith.truncf %39 : vector<16x16xf32> to vector<16x16xbf16>
    %c0_12 = arith.constant 0 : index
    %c0_13 = arith.constant 0 : index
    %c0_14 = arith.constant 0 : index
    %41 = vector.load %arg3[%c0_12, %c0_13, %c0_14] : memref<2x16x32xbf16, #tpu.memory_space<vmem>>, vector<1x16x32xbf16>
    %42 = vector.shape_cast %41 : vector<1x16x32xbf16> to vector<16x32xbf16>
    %cst_15 = arith.constant dense<0.000000e+00> : vector<16x32xf32>
    %43 = tpu.matmul %40, %42, %cst_15 {dimension_numbers = #tpu.dot_dimension_numbers<[1], [0], [0], [1], [0, 0, 1, 1], [], []>} : vector<16x16xbf16>, vector<16x32xbf16>, vector<16x32xf32> -> vector<16x32xf32>
    %44 = arith.addf %4, %43 : vector<16x32xf32>
    %45 = vector.extract_strided_slice %3 {offsets = [0, 16], sizes = [16, 16], strides = [1, 1]} : vector<16x96xf32> to vector<16x16xf32>
    %46 = vector.extract_strided_slice %3 {offsets = [0, 48], sizes = [16, 16], strides = [1, 1]} : vector<16x96xf32> to vector<16x16xf32>
    %47 = vector.extract_strided_slice %3 {offsets = [0, 80], sizes = [16, 16], strides = [1, 1]} : vector<16x96xf32> to vector<16x16xf32>
    %48 = vector.shape_cast %45 : vector<16x16xf32> to vector<1x16x16xf32>
    %49 = arith.truncf %48 : vector<1x16x16xf32> to vector<1x16x16xbf16>
    %50 = vector.shape_cast %46 : vector<16x16xf32> to vector<1x16x16xf32>
    %51 = arith.truncf %50 : vector<1x16x16xf32> to vector<1x16x16xbf16>
    %52 = vector.shape_cast %47 : vector<16x16xf32> to vector<1x16x16xf32>
    %53 = arith.truncf %52 : vector<1x16x16xf32> to vector<1x16x16xbf16>
    %cst_16 = arith.constant 0xFF800000 : f32
    %54 = vector.broadcast %cst_16 : f32 to vector<1x16x1xf32>
    %cst_17 = arith.constant 0.000000e+00 : f32
    %55 = vector.broadcast %cst_17 : f32 to vector<1x16x1xf32>
    %cst_18 = arith.constant 0.000000e+00 : f32
    %56 = vector.broadcast %cst_18 : f32 to vector<1x16x16xf32>
    "tpu.trace_start"() <{level = 10 : i32, message = "bqd,bkd->bqk"}> : () -> ()
    %cst_19 = arith.constant dense<0.000000e+00> : vector<1x16x16xf32>
    %57 = tpu.matmul %49, %51, %cst_19 {dimension_numbers = #tpu.dot_dimension_numbers<[2], [2], [1], [1], [0, 0, 0, 1, 1, 1], [0], [0]>} : vector<1x16x16xbf16>, vector<1x16x16xbf16>, vector<1x16x16xf32> -> vector<1x16x16xf32>
    "tpu.trace_stop"() : () -> ()
    %cst_20 = arith.constant dense<0xFF800000> : vector<1x16xf32>
    %58 = vector.multi_reduction <maximumf>, %57, %cst_20 [2] : vector<1x16x16xf32> to vector<1x16xf32>
    %59 = vector.shape_cast %58 : vector<1x16xf32> to vector<1x16x1xf32>
    %60 = arith.maximumf %54, %59 : vector<1x16x1xf32>
    %61 = arith.subf %54, %60 : vector<1x16x1xf32>
    %62 = math.exp %61 : vector<1x16x1xf32>
    %63 = vector.broadcast %60 : vector<1x16x1xf32> to vector<1x16x16xf32>
    %64 = arith.subf %57, %63 : vector<1x16x16xf32>
    %65 = arith.truncf %64 : vector<1x16x16xf32> to vector<1x16x16xbf16>
    %66 = math.exp %65 : vector<1x16x16xbf16>
    %67 = arith.mulf %62, %55 : vector<1x16x1xf32>
    %68 = arith.extf %66 : vector<1x16x16xbf16> to vector<1x16x16xf32>
    %cst_21 = arith.constant dense<0.000000e+00> : vector<1x16xf32>
    %69 = vector.multi_reduction <add>, %68, %cst_21 [2] : vector<1x16x16xf32> to vector<1x16xf32>
    %70 = vector.shape_cast %69 : vector<1x16xf32> to vector<1x16x1xf32>
    %71 = arith.addf %67, %70 : vector<1x16x1xf32>
    %72 = vector.broadcast %62 : vector<1x16x1xf32> to vector<1x16x16xf32>
    %73 = arith.mulf %72, %56 : vector<1x16x16xf32>
    "tpu.trace_start"() <{level = 10 : i32, message = "bqk,bkd->bqd"}> : () -> ()
    %cst_22 = arith.constant dense<0.000000e+00> : vector<1x16x16xf32>
    %74 = tpu.matmul %66, %53, %cst_22 {dimension_numbers = #tpu.dot_dimension_numbers<[2], [1], [1], [2], [0, 0, 0, 1, 1, 2], [0], [0]>} : vector<1x16x16xbf16>, vector<1x16x16xbf16>, vector<1x16x16xf32> -> vector<1x16x16xf32>
    "tpu.trace_stop"() : () -> ()
    %75 = arith.addf %73, %74 : vector<1x16x16xf32>
    %76 = tpu.reciprocal %71 {approx = true} : vector<1x16x1xf32> -> vector<1x16x1xf32>
    %77 = vector.broadcast %76 : vector<1x16x1xf32> to vector<1x16x16xf32>
    %78 = arith.mulf %75, %77 : vector<1x16x16xf32>
    %79 = vector.shape_cast %78 : vector<1x16x16xf32> to vector<16x16xf32>
    %80 = arith.truncf %79 : vector<16x16xf32> to vector<16x16xbf16>
    %c1 = arith.constant 1 : index
    %c0_23 = arith.constant 0 : index
    %c0_24 = arith.constant 0 : index
    %81 = vector.load %arg3[%c1, %c0_23, %c0_24] : memref<2x16x32xbf16, #tpu.memory_space<vmem>>, vector<1x16x32xbf16>
    %82 = vector.shape_cast %81 : vector<1x16x32xbf16> to vector<16x32xbf16>
    %cst_25 = arith.constant dense<0.000000e+00> : vector<16x32xf32>
    %83 = tpu.matmul %80, %82, %cst_25 {dimension_numbers = #tpu.dot_dimension_numbers<[1], [0], [0], [1], [0, 0, 1, 1], [], []>} : vector<16x16xbf16>, vector<16x32xbf16>, vector<16x32xf32> -> vector<16x32xf32>
    %84 = arith.addf %44, %83 : vector<16x32xf32>
    %c0_26 = arith.constant 0 : index
    %c0_27 = arith.constant 0 : index
    %85 = vector.load %arg4[%c0_26, %c0_27] : memref<1x32xf32, #tpu.memory_space<vmem>>, vector<1x32xf32>
    %86 = vector.broadcast %85 : vector<1x32xf32> to vector<16x32xf32>
    %87 = arith.addf %84, %86 : vector<16x32xf32>
    %88 = vector.shape_cast %87 : vector<16x32xf32> to vector<1x16x32xf32>
    %c0_28 = arith.constant 0 : index
    %c0_29 = arith.constant 0 : index
    %c0_30 = arith.constant 0 : index
    %89 = vector.load %arg5[%c0_28, %c0_29, %c0_30] : memref<1x16x32xf32, #tpu.memory_space<vmem>>, vector<1x16x32xf32>
    tpu.vector_store %arg5[%c0_28, %c0_29, %c0_30], %88 {strides = array<i32>} : memref<1x16x32xf32, #tpu.memory_space<vmem>>, vector<1x16x32xf32>,
    return
  }
  func.func @transform_0(%arg0: i32) -> (i32, i32, i32) {
    %c0_i32 = arith.constant 0 : i32
    %c0_i32_0 = arith.constant 0 : i32
    %c0_i32_1 = arith.constant 0 : i32
    return %arg0, %c0_i32, %c0_i32_0 : i32, i32, i32
  }
  func.func @transform_1(%arg0: i32) -> (i32, i32) {
    %c0_i32 = arith.constant 0 : i32
    %c0_i32_0 = arith.constant 0 : i32
    %c0_i32_1 = arith.constant 0 : i32
    return %c0_i32, %c0_i32_0 : i32, i32
  }
  func.func @transform_2(%arg0: i32) -> (i32, i32, i32) {
    %c0_i32 = arith.constant 0 : i32
    %c0_i32_0 = arith.constant 0 : i32
    %c0_i32_1 = arith.constant 0 : i32
    %c0_i32_2 = arith.constant 0 : i32
    return %c0_i32, %c0_i32_0, %c0_i32_1 : i32, i32, i32
  }
  func.func @transform_3(%arg0: i32) -> (i32, i32) {
    %c0_i32 = arith.constant 0 : i32
    %c0_i32_0 = arith.constant 0 : i32
    %c0_i32_1 = arith.constant 0 : i32
    return %c0_i32, %c0_i32_0 : i32, i32
  }
  func.func @transform_4(%arg0: i32) -> (i32, i32, i32) {
    %c0_i32 = arith.constant 0 : i32
    %c0_i32_0 = arith.constant 0 : i32
    %c0_i32_1 = arith.constant 0 : i32
    return %arg0, %c0_i32, %c0_i32_0 : i32, i32, i32
  }
}

</mosaic_0001>

<bundles_post_ra>
// kernel: tpu_custom_call.1
= control target key start
LH: loop header
LB: loop body
LE: loop exit
PB: predicated region body
PF: predicated region fallthrough
CT: control target
= control target key end

     0   :  { %9 = vsyncpa [#allocation3], 0  ;;  %s1488_s0 = inlined_call_operand.hbm [shape: bf16[2,16,32], index: 0, kind: input, shape index: {}]   ;;  %s1489_s1 = inlined_call_operand.hbm [shape: bf16[32,96], index: 1, kind: input, shape index: {}]   ;;  %s1490_s2 = inlined_call_operand.hbm [shape: bf16[2,16,32], index: 2, kind: input, shape index: {}]   ;;  %s1491_s3 = inlined_call_operand.vmem [shape: f32[1,32], index: 3, kind: input, shape index: {}]   ;;  %s1492_s4 = inlined_call_operand.hbm [shape: f32[2,16,32], index: 4, kind: output, shape index: {}]  }
   0x1   :  { %11 = vsyncpa [#allocation3 + $0x1], 0 }
   0x2   :  { %12 = vsyncpa [#allocation6], 0 }
   0x3   :  { %13 = vsyncpa [#allocation4], 0 }
   0x4   :  { %15 = vsyncpa [#allocation4 + $0x1], 0  ;;  %s1200_s15 = smov 0   ;;  %s1202_s16 = smov 0  }
   0x5   :  { %s1204_s17 = smov 0   ;;  %s1206_s18 = smov 0  }
   0x6 LB: > { %s1221_s19 = sadd.s32 4294967295, %s1158_s18   ;;  %s807_s20 = sadd.s32 4294967294, %s1158_s18   ;;  %s1158_s18 = sphi %s1206_s18, %s1512_s18   ;;  %s1154_s17 = sphi %s1204_s17, %s1511_s17   ;;  %s1150_s16 = sphi %s1202_s16, %s1510_s16   ;;  %s1146_s15 = sphi %s1200_s15, %s1509_s15  }
   0x7   : > { %p41_p0 = scmp.ne.s32.totalorder %s1150_s16, %s1146_s15  ;;  %p1493_p1 = scmp.eq.s32.totalorder %s1221_s19, 0 }
   0x8   : > { %p134_p3 = scmp.eq.s32.totalorder %s807_s20, 1  ;;  %p808_p5 = scmp.ge.s32.totalorder %s1158_s18, 1 }
   0x9   : > { %p1230_p4 = por %p1493_p1, %p41_p0  ;;  %p141_p7 = scmp.lt.s32.totalorder %s1158_s18, 3 }
   0xa   : > { %p1235_p6 = por %p134_p3, %p41_p0  ;;  %s1160_s24 = smov [#allocation5]  }
   0xb   : > { %s1496_s21 = scalar_select %p1230_p4, 1, 0 }
   0xc   : > { %s1497_s22 = scalar_select %p1235_p6, 1, 0 }
   0xd   : > { %p1240_p8 = pnand %p808_p5, %p141_p7  ;;  %s153_s25 = sshll.u32 %s1160_s24, 4  ;;  %s1244_s25 = int_to_ptr.vmem [resolvable:$true] %s153_s25 }
   0xe   : > { %s1161_s27 = smov [#allocation7]   ;;  %s1002_s5 = scalar_lea.hbm %s1489_s1, 256 }
   0xf   : > { %p911_p9 = pneg %p1240_p8  ;;  %s166_s28 = sshll.u32 %s1161_s27, 4  ;;  %s1255_s28 = int_to_ptr.vmem [resolvable:$true] %s166_s28 }
  0x10   : > { %p1003_p12 = scmp.ne.s32.totalorder %s1489_s1, %s1002_s5  ;;  %p1009_p5 = scmp.lt.u32.totalorder %s1002_s5, %s1489_s1 }
  0x11   : > { %p1251_p11 = pnand %p911_p9, %p1493_p1 }
  0x13   : > { %p1004_p13 = pneg %p1251_p11 }
  0x15   : > { %p1005_p0 = pnand %p1004_p13, %p1003_p12 }
  0x17   : > { %p1006_p3 = pneg %p1005_p0 }
  0x19   : > { %p1011_p7 = pnand %p1009_p5, %p1006_p3 }
  0x1b   : > { %1014 = shalt.err (!%p1011_p7)
}
  0x1c   : > { %s1015_s10 = scalar_lea.vmem %s1244_s25, 256  ;;  %p1023_p2 = scmp.lt.s32.totalorder %s1244_s25, %s1244_s25 }
  0x1d   : > { %p1016_p9 = scmp.ne.s32.totalorder %s1244_s25, %s1015_s10  ;;  %p1024_p12 = scmp.lt.s32.totalorder %s1015_s10, %s1015_s10 }
  0x1f   : > { %p1018_p10 = pnand %p1016_p9, %p1004_p13  ;;  %p1025_p0 = por %p1024_p12, %p1023_p2 }
  0x21   : > { %p1019_p1 = pneg %p1018_p10 }
  0x23   : > { %p1026_p6 = pnand %p1025_p0, %p1019_p1 }
  0x25   : > { %1029 = shalt.err (!%p1026_p6)
}
  0x26   : > { %s1162_s11 = smov 64   ;;  %s1163_s12 = smov 4  }
  0x27   : > { %914 = dma.hbm_to_vmem [thread:$0]  (!%p1251_p11), %s1489_s1, 256, %s1244_s25, [#allocation6], %s1162_s11, %s1162_s11, %s1163_s12  }
  0x28   : > { %s1030_s27 = scalar_lea.hbm %s1490_s2, 256 }
  0x29   : > { %p1031_p1 = scmp.ne.s32.totalorder %s1490_s2, %s1030_s27  ;;  %p1037_p10 = scmp.lt.u32.totalorder %s1030_s27, %s1490_s2 }
  0x2b   : > { %p1033_p2 = pnand %p1031_p1, %p1004_p13 }
  0x2d   : > { %p1034_p6 = pneg %p1033_p2 }
  0x2f   : > { %p1039_p3 = pnand %p1037_p10, %p1034_p6 }
  0x31   : > { %1042 = shalt.err (!%p1039_p3)
}
  0x32   : > { %s1043_s25 = scalar_lea.vmem %s1255_s28, 256  ;;  %p1051_p12 = scmp.lt.s32.totalorder %s1255_s28, %s1255_s28 }
  0x33   : > { %p1044_p5 = scmp.ne.s32.totalorder %s1255_s28, %s1043_s25  ;;  %p1052_p0 = scmp.lt.s32.totalorder %s1043_s25, %s1043_s25 }
  0x35   : > { %p1046_p7 = pnand %p1044_p5, %p1004_p13  ;;  %p1053_p1 = por %p1052_p0, %p1051_p12 }
  0x37   : > { %p1047_p9 = pneg %p1046_p7 }
  0x39   : > { %p1054_p2 = pnand %p1053_p1, %p1047_p9 }
  0x3b   : > { %1057 = shalt.err (!%p1054_p2)
}
  0x3c   : > { %917 = dma.hbm_to_vmem [thread:$0]  (!%p1251_p11), %s1490_s2, 256, %s1255_s28, [#allocation6], %s1162_s11, %s1162_s11, %s1163_s12  }
  0x3d   : > { %s1316_s26 = sadd.s32 1, %s1158_s18   ;;  %s28_s9 = sadd.s32 1, %s1154_s17 }
  0x3e   : > { %s25_s10 = ssub.s32 %s1158_s18, %s1316_s26  ;;  %p35_p13 = scmp.ne.s32.totalorder %s1154_s17, %s1150_s16 }
  0x3f   : > { %p26_p6 = scmp.eq.s32.totalorder %s25_s10, 0  ;;  %p36_p10 = scmp.eq.s32.totalorder %s1158_s18, 0 }
  0x40   : > { %p1500_p3 = scmp.eq.s32.totalorder %s1221_s19, 1  ;;  %p928_p7 = scmp.lt.s32.totalorder %s1158_s18, 2 }
  0x41   : > { %s1332_s14 = scalar_select %p26_p6, %s1154_s17, %s28_s9  }
  0x42   : > { %p1326_p5 = por %p1500_p3, %p35_p13  ;;  %p37_p9 = por %p36_p10, %p35_p13 }
  0x43   : > { %s183_s20 = sand.u32 1, %s1154_s17   ;;  %s838_s28 = sshll.u32 %s1158_s18, 7 }
  0x44   : > { %s1501_s13 = scalar_select %p1326_p5, 1, 0 }
  0x45   : > { %s812_s24 = sshll.u32 %s183_s20, 3  ;;  %s1339_s30 = scalar_lea.hbm %s1488_s0, %s838_s28 }
  0x46   : > { %s187_s5 = scalar_lea.vmem [#allocation2], %s812_s24  ;;  %p1343_p11 = pnand %p928_p7, %p37_p9 }
  0x47   : > { %s194_s6 = sshll.u32 %s187_s5, 4  ;;  %s1347_s7 = scalar_lea.sflag [#allocation3], %s183_s20  ;;  %s1341_s6 = int_to_ptr.vmem [resolvable:$true] %s194_s6 }
  0x48   : > { %s1058_s8 = scalar_lea.hbm %s1339_s30, 128  ;;  %p1060_p0 = pneg %p1343_p11 }
  0x49   : > { %p1059_p12 = scmp.ne.s32.totalorder %s1339_s30, %s1058_s8  ;;  %s1063_s24 = scalar_lea.hbm %s1488_s0, 256 }
  0x4a   : > { %p1064_p13 = scmp.lt.u32.totalorder %s1339_s30, %s1488_s0  ;;  %p1065_p6 = scmp.lt.u32.totalorder %s1063_s24, %s1058_s8 }
  0x4b   : > { %p1061_p1 = pnand %p1060_p0, %p1059_p12  ;;  %p1067_p3 = scmp.lt.u32.totalorder %s1058_s8, %s1339_s30 }
  0x4c   : > { %p1066_p10 = por %p1065_p6, %p1064_p13 }
  0x4d   : > { %p1062_p2 = pneg %p1061_p1 }
  0x4e   : > { %p1068_p7 = por %p1067_p3, %p1066_p10 }
  0x50   : > { %p1069_p9 = pnand %p1068_p7, %p1062_p2 }
  0x52   : > { %1072 = shalt.err (!%p1069_p9)
}
  0x53   : > { %s1073_s20 = scalar_lea.vmem %s1341_s6, 128  ;;  %s1164_s29 = smov [#allocation2]  }
  0x54   : > { %p1074_p12 = scmp.ne.s32.totalorder %s1341_s6, %s1073_s20  ;;  %s1078_s5 = sshll.u32 %s1164_s29, 4  ;;  %s1079_s5 = int_to_ptr.vmem [resolvable:$false] %s1078_s5 }
  0x55   : > { %s1080_s9 = scalar_lea.vmem %s1079_s5, 256  ;;  %p1081_p4 = scmp.lt.s32.totalorder %s1341_s6, %s1079_s5 }
  0x56   : > { %p1076_p1 = pnand %p1074_p12, %p1060_p0  ;;  %p1082_p13 = scmp.lt.s32.totalorder %s1080_s9, %s1073_s20 }
  0x58   : > { %p1077_p5 = pneg %p1076_p1  ;;  %p1083_p6 = por %p1082_p13, %p1081_p4 }
  0x5a   : > { %p1084_p10 = pnand %p1083_p6, %p1077_p5 }
  0x5c   : > { %1087 = shalt.err (!%p1084_p10)
}
  0x5d   : > { %921 = dma.hbm_to_vmem [thread:$0]  (!%p1343_p11), %s1339_s30, 128, %s1341_s6, %s1347_s7, %s1162_s11, %s1162_s11, %s1163_s12  }
  0x5e   : > { %206 = sbr.rel (%p1240_p8) target bundleno = 1290 (0x50a), region = 36  ;;  %s1381_s8 = sand.u32 (!%p1240_p8), 1, %s1150_s16  }
  0x5f   : > { %s816_s10 = sshll.u32 (!%p1240_p8), %s1381_s8, 3  ;;  %s209_s24 = scalar_lea.sflag (!%p1240_p8), [#allocation3], %s1381_s8 }
  0x60   : > { %s212_s28 = scalar_lea.vmem (!%p1240_p8), [#allocation2], %s816_s10  ;;  %p1503_p4 = scmp.ne.s32.totalorder (!%p1240_p8), %s1496_s21, 0 }
  0x65   : > { %1133 = dma.done.wait (%p1503_p4), %s209_s24, 128  }
  0x66   : > { %1135 = vsyncadd (%p1503_p4), %s209_s24, 4294967168  ;;  %p1504_p5 = scmp.eq.s32.totalorder %s1221_s19, 0 }
  0x68   : > { %1137 = dma.done.wait (%p1504_p5), [#allocation6], 512   ;;  %p1505_p11 = pmov %p1504_p5 }
  0x69   : > { %v1165_v0 = vmov 0.0   ;;  %vm1166_vm0 = vmmov 0   ;;  %v977_v1 = vld [vmem:[#allocation5] sm:$0xff]   ;;  %v978_v2 = vld [vmem:[#allocation5 + $0x8] sm:$0xff]   ;;  %v979_v3 = vld [vmem:[%s212_s28] sm:$0xff]   ;;  %vm269_vm1 = vcmask 261120  }
  0x6a   : > { %1139 = vsyncadd (%p1505_p11), [#allocation6], 4294966784  ;;  %855 = vmatprep.subr.bf16.mxu0 %v1165_v0  ;;  %859 = vmatprep.mubr.msk.bf16.mxu0 %vm1166_vm0, %v1165_v0  ;;  %s1167_s21 = smov 112   ;;  %s1168_s23 = smov 96   ;;  %vm318_vm2 = vcmask 130048   ;;  %v980_v50 = vld [vmem:[#allocation7] sm:$0xff]  }
  0x6b   : > { %863 = vmatprep.subr.bf16.mxu1 %v1165_v0  ;;  %865 = vmatprep.mubr.msk.bf16.mxu1 %vm1166_vm0, %v1165_v0  ;;  %s1169_s11 = smov 80   ;;  %s1170_s12 = smov 48   ;;  %v981_v51 = vld [vmem:[#allocation7 + $0x8] sm:$0xff]  }
  0x6c   : > { %856 = vmatpush3.bf16.msra.mxu0 %v977_v1  ;;  %s1171_s30 = smov 64   ;;  %s819_s6 = sshll.u32 %s1381_s8, 4 }
  0x6d   : > { %857 = vmatprep.subr.bf16.mxu0 %v1165_v0  ;;  %s839_s27 = sshll.u32 %s1221_s19, 8  ;;  %s244_s20 = scalar_lea.vmem [#allocation8], %s819_s6 }
  0x6e   : > { %s715_s29 = sshll.u32 %s244_s20, 4  ;;  %s1440_s10 = scalar_lea.hbm %s1492_s4, %s839_s27  ;;  %s1442_s29 = int_to_ptr.vmem [resolvable:$true] %s715_s29 }
  0x6f   : > { %s702_s19 = scalar_lea.sflag [#allocation4], %s1381_s8  ;;  %s1088_s24 = scalar_lea.vmem %s1442_s29, 256 }
  0x70   : > { %858 = vmatpush3.bf16.msra.mxu0 %v978_v2  ;;  %p1089_p8 = scmp.ne.s32.totalorder %s1442_s29, %s1088_s24  ;;  %p1506_p0 = scmp.ne.s32.totalorder %s1501_s13, 0 }
  0x71   : > { %869 = vmatprep.subr.bf16.mxu0 %v1165_v0  ;;  %s1172_s28 = smov [#allocation8]  }
  0x72   : > { %p1090_p2 = pnand %p1089_p8, %p1506_p0 }
  0x73   : > { %860 = vmatmul.mubr.msk.bf16.vlgmr.msra.gmra.mrb[0].mxu0 %vm269_vm1, %v979_v3 }
  0x74   : > { %871 = vmatprep.mubr.msk.bf16.mxu0 %vm1166_vm0, %v1165_v0  ;;  %p1091_p3 = pneg %p1090_p2 }
 0x146   : > { %v307_v4 = vpop.f32.mrb[0].mxu0 }
 0x147   : > { %v861_v5 = vpop.f32.mrb[1].mxu0 }
 0x148   : > { %v310_v6 = vpop.f32.mrb[2].mxu0 }
 0x149   : > { %v314_v7 = vpack.c.bf16 %v310_v6, %v307_v4  ;;  %v862_v8 = vpop.f32.mrb[3].mxu0 }
 0x14b   : > { %452 = vrot.lane.b32.xlu1 %v314_v7, %s1167_s21  ;;  %316 = vrot.lane.b32.xlu0 %v314_v7, %s1168_s23  ;;  %s1092_s21 = sshll.u32 %s1172_s28, 4  ;;  %s1093_s21 = int_to_ptr.vmem [resolvable:$false] %s1092_s21 }
 0x14c   : > { %s1094_s23 = scalar_lea.vmem %s1093_s21, 512  ;;  %p1095_p7 = scmp.lt.s32.totalorder %s1442_s29, %s1093_s21 }
 0x14d   : > { %p1096_p9 = scmp.lt.s32.totalorder %s1094_s23, %s1088_s24 }
 0x14f   : > { %454 = vrot.lane.b32.xlu0 %v314_v7, %s1169_s11  ;;  %p1097_p12 = por %p1096_p9, %p1095_p7 }
 0x151   : > { %p1098_p1 = pnand %p1097_p12, %p1091_p3 }
 0x1bd   : > { %v317_v9 = vpop.permute.xlu0 %316  ;;  %v453_v13 = vpop.permute.xlu1 %452 }
 0x1be   : > { %v323_v10 = vsel %vm318_vm2, %v317_v9, 0 }
 0x1bf   : > { %864 = vmatpush3.bf16.xpose.msra.mxu1 %v323_v10 }
 0x1c0   : > { %875 = vmatprep.subr.bf16.mxu1 %v1165_v0 }
 0x1c1   : > { %v455_v11 = vpop.permute.xlu0 %454 }
 0x1c2   : > { %v460_v12 = vsel %vm318_vm2, %v455_v11, 0 }
 0x1c6   : > { %866 = vmatmul.mubr.msk.bf16.vlgmr.msra.gmra.mrb[0].mxu1 %vm318_vm2, %v314_v7 }
 0x1c7   : > { %876 = vmatpush3.bf16.xpose.msra.mxu1 %v460_v12  ;;  %877 = vmatprep.mubr.msk.bf16.mxu1 %vm1166_vm0, %v1165_v0 }
 0x1c8   : > { %887 = vmatprep.subr.bf16.mxu1 %v1165_v0 }
 0x1ce   : > { %878 = vmatmul.mubr.msk.bf16.vlgmr.msra.gmra.mrb[4].mxu1 %vm318_vm2, %v453_v13 }
 0x1cf   : > { %889 = vmatprep.mubr.msk.bf16.mxu1 %vm1166_vm0, %v1165_v0  ;;  %888 = vmatpush3.bf16.msra.mxu1 %v981_v51 }
 0x299   : > { %v359_v14 = vpop.f32.mrb[0].mxu1 }
 0x29a   : > { %v867_v15 = vpop.f32.mrb[1].mxu1  ;;  %v366_v16 = vsel %vm318_vm2, %v359_v14, -inf }
 0x29b   : > { %367 = vmax.xlane.f32.xlu1 %v366_v16  ;;  %v362_v17 = vpop.f32.mrb[2].mxu1 }
 0x29c   : > { %v868_v18 = vpop.f32.mrb[3].mxu1  ;;  %v369_v19 = vsel %vm318_vm2, %v362_v17, -inf }
 0x29d   : > { %370 = vmax.xlane.f32.xlu0 %v369_v19 }
 0x2a1   : > { %v496_v20 = vpop.f32.mrb[4].mxu1 }
 0x2a2   : > { %v879_v21 = vpop.f32.mrb[5].mxu1  ;;  %v503_v22 = vsel %vm318_vm2, %v496_v20, -inf }
 0x2a3   : > { %504 = vmax.xlane.f32.xlu0 %v503_v22  ;;  %v499_v23 = vpop.f32.mrb[6].mxu1 }
 0x2a4   : > { %v880_v24 = vpop.f32.mrb[7].mxu1  ;;  %v506_v25 = vsel %vm318_vm2, %v499_v23, -inf }
 0x2a5   : > { %507 = vmax.xlane.f32.xlu1 %v506_v25 }
 0x2b6   : > { %533 = vrot.lane.b32.xlu1 %v314_v7, %s1170_s12 }
 0x2b9   : > { %396 = vrot.lane.b32.xlu0 %v314_v7, %s1171_s30 }
 0x328   : > { %v368_v26 = vpop.xlane.xlu1 %367 }
 0x329   : > { %v378_v28 = vsub.f32 %v359_v14, %v368_v26  ;;  %v372_v52 = vsub.f32 -inf, %v368_v26 }
 0x32a   : > { %v371_v27 = vpop.xlane.xlu0 %370 }
 0x32b   : > { %v379_v29 = vsub.f32 %v362_v17, %v371_v27  ;;  %v373_v53 = vsub.f32 -inf, %v371_v27  ;;  %v374_v54 = vmul.f32 1.442695, %v372_v52 }
 0x32d   : > { %v380_v30 = vpack.c.bf16 %v379_v29, %v378_v28  ;;  %v376_v55 = vmul.f32 1.442695, %v373_v53 }
 0x32f   : > { %v382_v31 = vmul.bf16 1069105081, %v380_v30 }
 0x330   : > { %v505_v32 = vpop.xlane.xlu0 %504 }
 0x331   : > { %982 = vpow.bf16 %v382_v31  ;;  %v515_v34 = vsub.f32 %v496_v20, %v505_v32  ;;  %v509_v56 = vsub.f32 -inf, %v505_v32 }
 0x332   : > { %v508_v33 = vpop.xlane.xlu1 %507 }
 0x333   : > { %v516_v35 = vsub.f32 %v499_v23, %v508_v33  ;;  %v510_v57 = vsub.f32 -inf, %v508_v33  ;;  %v511_v58 = vmul.f32 1.442695, %v509_v56 }
 0x334   : > { %v397_v36 = vpop.permute.xlu0 %396 }
 0x335   : > { %v517_v37 = vpack.c.bf16 %v516_v35, %v515_v34  ;;  %870 = vmatpush3.bf16.msra.mxu0 %v397_v36  ;;  %v513_v59 = vmul.f32 1.442695, %v510_v57 }
 0x336   : > { %881 = vmatprep.subr.bf16.mxu0 %v1165_v0  ;;  %v534_v40 = vpop.permute.xlu1 %533 }
 0x337   : > { %v519_v38 = vmul.bf16 1069105081, %v517_v37 }
 0x339   : > { %984 = vpow.bf16 %v519_v38 }
 0x33a   : > { %986 = vpow2.f32 %v374_v54 }
 0x33b   : > { %988 = vpow2.f32 %v376_v55 }
 0x33c   : > { %v983_v39 = vpop.eup %982  ;;  %990 = vpow2.f32 %v511_v58 }
 0x33d   : > { %872 = vmatmul.mubr.msk.bf16.vlgmr.msra.gmra.mrb[4].mxu0 %vm318_vm2, %v983_v39  ;;  %v387_v41 = vunpack.c.h.bf16 %v983_v39  ;;  %v386_v42 = vunpack.c.l.bf16 %v983_v39  ;;  %992 = vpow2.f32 %v513_v59  ;;  %v832_v39 = vld [vmem:[%s1491_s3] ss:$0 sm:$0xff] }
 0x33e   : > { %882 = vmatpush3.bf16.msra.mxu0 %v534_v40  ;;  %883 = vmatprep.mubr.msk.bf16.mxu0 %vm1166_vm0, %v1165_v0 }
 0x33f   : > { %v391_v43 = vsel %vm318_vm2, %v387_v41, 0.0  ;;  %v388_v44 = vsel %vm318_vm2, %v386_v42, 0.0  ;;  %893 = vmatprep.subr.bf16.mxu0 %v1165_v0 }
 0x340   : > { %392 = vadd.xlane.f32.xlu0 %v391_v43  ;;  %389 = vadd.xlane.f32.xlu1 %v388_v44 }
 0x344   : > { %v985_v45 = vpop.eup %984 }
 0x345   : > { %884 = vmatmul.mubr.msk.bf16.vlgmr.msra.gmra.mrb[8].mxu0 %vm318_vm2, %v985_v45  ;;  %v524_v46 = vunpack.c.h.bf16 %v985_v45  ;;  %v523_v47 = vunpack.c.l.bf16 %v985_v45  ;;  %v987_v60 = vpop.eup %986 }
 0x346   : > { %895 = vmatprep.mubr.msk.bf16.mxu0 %vm1166_vm0, %v1165_v0  ;;  %894 = vmatpush3.bf16.msra.mxu0 %v980_v50  ;;  %v989_v61 = vpop.eup %988  ;;  %v384_v63 = vmul.f32 0.0, %v987_v60 }
 0x347   : > { %v528_v48 = vsel %vm318_vm2, %v524_v46, 0.0  ;;  %v525_v49 = vsel %vm318_vm2, %v523_v47, 0.0  ;;  %v385_v2 = vmul.f32 0.0, %v989_v61  ;;  %v991_v4 = vpop.eup %990 }
 0x348   : > { %529 = vadd.xlane.f32.xlu1 %v528_v48  ;;  %526 = vadd.xlane.f32.xlu0 %v525_v49  ;;  %v993_v5 = vpop.eup %992  ;;  %v521_v7 = vmul.f32 0.0, %v991_v4 }
 0x349   : > { %v522_v9 = vmul.f32 0.0, %v993_v5 }
 0x3cd   : > { %v390_v62 = vpop.xlane.xlu1 %389  ;;  %v393_v0 = vpop.xlane.xlu0 %392 }
 0x3ce   : > { %v394_v1 = vadd.f32 %v390_v62, %v384_v63  ;;  %v395_v3 = vadd.f32 %v393_v0, %v385_v2 }
 0x3d0   : > { %994 = vrcp.f32 %v394_v1 }
 0x3d1   : > { %996 = vrcp.f32 %v395_v3 }
 0x3d5   : > { %v527_v6 = vpop.xlane.xlu0 %526  ;;  %v530_v8 = vpop.xlane.xlu1 %529 }
 0x3d6   : > { %v531_v10 = vadd.f32 %v527_v6, %v521_v7  ;;  %v532_v11 = vadd.f32 %v530_v8, %v522_v9 }
 0x3d8   : > { %998 = vrcp.f32 %v531_v10 }
 0x3d9   : > { %1000 = vrcp.f32 %v532_v11 }
 0x3da   : > { %v995_v15 = vpop.eup %994 }
 0x3db   : > { %v997_v20 = vpop.eup %996 }
 0x3e2   : > { %v999_v26 = vpop.eup %998 }
 0x3e3   : > { %v1001_v31 = vpop.eup %1000 }
 0x410   : > { %v436_v12 = vpop.f32.mrb[4].mxu0 }
 0x411   : > { %v443_v13 = vadd.f32 %v436_v12, %v384_v63  ;;  %v873_v14 = vpop.f32.mrb[5].mxu0 }
 0x412   : > { %v439_v16 = vpop.f32.mrb[6].mxu0 }
 0x413   : > { %v447_v17 = vmul.f32 %v995_v15, %v443_v13  ;;  %v444_v18 = vadd.f32 %v439_v16, %v385_v2  ;;  %v874_v19 = vpop.f32.mrb[7].mxu0 }
 0x415   : > { %v448_v21 = vmul.f32 %v997_v20, %v444_v18 }
 0x417   : > { %v449_v22 = vpack.c.bf16 %v448_v21, %v447_v17 }
 0x418   : > { %v573_v23 = vpop.f32.mrb[8].mxu0 }
 0x419   : > { %v580_v24 = vadd.f32 %v573_v23, %v521_v7  ;;  %v885_v25 = vpop.f32.mrb[9].mxu0  ;;  %896 = vmatmul.mubr.msk.bf16.vlgmr.msra.gmra.mrb[12].mxu0 %vm318_vm2, %v449_v22 }
 0x41a   : > { %v576_v27 = vpop.f32.mrb[10].mxu0 }
 0x41b   : > { %v584_v28 = vmul.f32 %v999_v26, %v580_v24  ;;  %v581_v29 = vadd.f32 %v576_v27, %v522_v9  ;;  %v886_v30 = vpop.f32.mrb[11].mxu0 }
 0x41d   : > { %v585_v32 = vmul.f32 %v1001_v31, %v581_v29 }
 0x41f   : > { %v586_v33 = vpack.c.bf16 %v585_v32, %v584_v28 }
 0x421   : > { %890 = vmatmul.mubr.msk.bf16.vlgmr.msra.gmra.mrb[8].mxu1 %vm318_vm2, %v586_v33 }
 0x4ec   : > { %v683_v34 = vpop.f32.mrb[12].mxu0 }
 0x4ed   : > { %v897_v35 = vpop.f32.mrb[13].mxu0 }
 0x4ee   : > { %v686_v36 = vpop.f32.mrb[14].mxu0 }
 0x4ef   : > { %v898_v37 = vpop.f32.mrb[15].mxu0 }
 0x4f4   : > { %v633_v38 = vpop.f32.mrb[8].mxu1 }
 0x4f5   : > { %v684_v40 = vadd.f32 %v683_v34, %v633_v38  ;;  %v891_v41 = vpop.f32.mrb[9].mxu1 }
 0x4f6   : > { %v636_v42 = vpop.f32.mrb[10].mxu1 }
 0x4f7   : > { %v697_v43 = vadd.f32 %v832_v39, %v684_v40  ;;  %v687_v44 = vadd.f32 %v686_v36, %v636_v42  ;;  %v892_v45 = vpop.f32.mrb[11].mxu1 }
 0x4f9   : > { %699 = vst.msk [vmem:[%s244_s20] sm:$0xff] %vm269_vm1, %v697_v43  ;;  %v698_v46 = vadd.f32 %v832_v39, %v687_v44 }
 0x4fb   : > { %700 = vst.msk [vmem:[%s244_s20 + $0x8] sm:$0xff] %vm269_vm1, %v698_v46 }
 0x4fc   : > { %1101 = shalt.err (!%p1098_p1)
}
 0x4fd   : > { %s1102_s11 = scalar_lea.hbm %s1440_s10, 256  ;;  %s1106_s6 = scalar_lea.hbm %s1492_s4, 512 }
 0x4fe   : > { %p1103_p13 = scmp.ne.s32.totalorder %s1440_s10, %s1102_s11  ;;  %p1107_p4 = scmp.lt.u32.totalorder %s1440_s10, %s1492_s4 }
 0x4ff   : > { %p1108_p5 = scmp.lt.u32.totalorder %s1106_s6, %s1102_s11  ;;  %p1110_p8 = scmp.lt.u32.totalorder %s1102_s11, %s1440_s10 }
 0x500   : > { %p1104_p6 = pnand %p1103_p13, %p1506_p0 }
 0x501   : > { %p1109_p11 = por %p1108_p5, %p1107_p4 }
 0x502   : > { %p1105_p10 = pneg %p1104_p6 }
 0x503   : > { %p1111_p2 = por %p1110_p8, %p1109_p11 }
 0x505   : > { %p1112_p3 = pnand %p1111_p2, %p1105_p10 }
 0x507   : > { %1115 = shalt.err (!%p1112_p3)
}
 0x508   : > { %s1173_s27 = smov 128   ;;  %s1174_s20 = smov 8  }
 0x509   : > { %909 = dma.vmem_to_hbm [thread:$0]  (%p1506_p0), %s1442_s29, 256, %s1440_s10, %s702_s19, %s1173_s27, %s1173_s27, %s1174_s20  }
 0x50a PF: > { %s730_s5 = sand.u32 1, %s1146_s15   ;;  %p1507_p7 = scmp.ne.s32.totalorder %s1497_s22, 0 }
 0x50b   : > { %p1508_p9 = scmp.ge.s32.totalorder %s1158_s18, 2  ;;  %s731_s9 = scalar_lea.sflag [#allocation4], %s730_s5 }
 0x50d   : > { %p923_p12 = pnand %p1508_p9, %p1507_p7 }
 0x50f   : > { %1141 = dma.done.wait (!%p923_p12), %s731_s9, 256  }
 0x510   : > { %1143 = vsyncadd (!%p923_p12), %s731_s9, 4294967040  ;;  %p18_p1 = scmp.ge.s32.totalorder %s1316_s26, 4   ;;  %s1509_s15 = smov %s1150_s16 }
 0x511   : > { %s1510_s16 = smov %s1154_s17  ;;  %s1511_s17 = smov %s1332_s14 }
 0x512   : > { %s1512_s18 = smov %s1316_s26  ;;  %20 = sbr.rel (!%p18_p1) target bundleno = 6 (0x6), region = 90 }
 0x519   :  { %736 = vsyncpa [#allocation3], 1 }
 0x51a   :  { %738 = vsyncpa [#allocation3 + $0x1], 1 }
 0x51b   :  { %739 = vsyncpa [#allocation6], 1 }
 0x51c   :  { %740 = vsyncpa [#allocation4], 1 }
 0x51d   :  { %742 = vsyncpa [#allocation4 + $0x1], 1 }

// kernel: tpu_custom_call.1
= control target key start
LH: loop header
LB: loop body
LE: loop exit
PB: predicated region body
PF: predicated region fallthrough
CT: control target
= control target key end

     0   :  { %9 = vsyncpa [#allocation3], 0  ;;  %s1488_s0 = inlined_call_operand.hbm [shape: bf16[2,16,32], index: 0, kind: input, shape index: {}]   ;;  %s1489_s1 = inlined_call_operand.hbm [shape: bf16[32,96], index: 1, kind: input, shape index: {}]   ;;  %s1490_s2 = inlined_call_operand.hbm [shape: bf16[2,16,32], index: 2, kind: input, shape index: {}]   ;;  %s1491_s3 = inlined_call_operand.vmem [shape: f32[1,32], index: 3, kind: input, shape index: {}]   ;;  %s1492_s4 = inlined_call_operand.hbm [shape: f32[2,16,32], index: 4, kind: output, shape index: {}]  }
   0x1   :  { %11 = vsyncpa [#allocation3 + $0x1], 0 }
   0x2   :  { %12 = vsyncpa [#allocation6], 0 }
   0x3   :  { %13 = vsyncpa [#allocation4], 0 }
   0x4   :  { %15 = vsyncpa [#allocation4 + $0x1], 0  ;;  %s1200_s15 = smov 0   ;;  %s1202_s16 = smov 0  }
   0x5   :  { %s1204_s17 = smov 0   ;;  %s1206_s18 = smov 0  }
   0x6 LB: > { %s1221_s19 = sadd.s32 4294967295, %s1158_s18   ;;  %s807_s20 = sadd.s32 4294967294, %s1158_s18   ;;  %s1158_s18 = sphi %s1206_s18, %s1512_s18   ;;  %s1154_s17 = sphi %s1204_s17, %s1511_s17   ;;  %s1150_s16 = sphi %s1202_s16, %s1510_s16   ;;  %s1146_s15 = sphi %s1200_s15, %s1509_s15  }
   0x7   : > { %p41_p0 = scmp.ne.s32.totalorder %s1150_s16, %s1146_s15  ;;  %p1493_p1 = scmp.eq.s32.totalorder %s1221_s19, 0 }
   0x8   : > { %p134_p3 = scmp.eq.s32.totalorder %s807_s20, 1  ;;  %p808_p5 = scmp.ge.s32.totalorder %s1158_s18, 1 }
   0x9   : > { %p1230_p4 = por %p1493_p1, %p41_p0  ;;  %p141_p7 = scmp.lt.s32.totalorder %s1158_s18, 3 }
   0xa   : > { %p1235_p6 = por %p134_p3, %p41_p0  ;;  %s1160_s24 = smov [#allocation5]  }
   0xb   : > { %s1496_s21 = scalar_select %p1230_p4, 1, 0 }
   0xc   : > { %s1497_s22 = scalar_select %p1235_p6, 1, 0 }
   0xd   : > { %p1240_p8 = pnand %p808_p5, %p141_p7  ;;  %s153_s25 = sshll.u32 %s1160_s24, 4  ;;  %s1244_s25 = int_to_ptr.vmem [resolvable:$true] %s153_s25 }
   0xe   : > { %s1161_s27 = smov [#allocation7]   ;;  %s1002_s5 = scalar_lea.hbm %s1489_s1, 256 }
   0xf   : > { %p911_p9 = pneg %p1240_p8  ;;  %s166_s28 = sshll.u32 %s1161_s27, 4  ;;  %s1255_s28 = int_to_ptr.vmem [resolvable:$true] %s166_s28 }
  0x10   : > { %p1003_p12 = scmp.ne.s32.totalorder %s1489_s1, %s1002_s5  ;;  %p1009_p5 = scmp.lt.u32.totalorder %s1002_s5, %s1489_s1 }
  0x11   : > { %p1251_p11 = pnand %p911_p9, %p1493_p1 }
  0x13   : > { %p1004_p13 = pneg %p1251_p11 }
  0x15   : > { %p1005_p0 = pnand %p1004_p13, %p1003_p12 }
  0x17   : > { %p1006_p3 = pneg %p1005_p0 }
  0x19   : > { %p1011_p7 = pnand %p1009_p5, %p1006_p3 }
  0x1b   : > { %1014 = shalt.err (!%p1011_p7)
}
  0x1c   : > { %s1015_s10 = scalar_lea.vmem %s1244_s25, 256  ;;  %p1023_p2 = scmp.lt.s32.totalorder %s1244_s25, %s1244_s25 }
  0x1d   : > { %p1016_p9 = scmp.ne.s32.totalorder %s1244_s25, %s1015_s10  ;;  %p1024_p12 = scmp.lt.s32.totalorder %s1015_s10, %s1015_s10 }
  0x1f   : > { %p1018_p10 = pnand %p1016_p9, %p1004_p13  ;;  %p1025_p0 = por %p1024_p12, %p1023_p2 }
  0x21   : > { %p1019_p1 = pneg %p1018_p10 }
  0x23   : > { %p1026_p6 = pnand %p1025_p0, %p1019_p1 }
  0x25   : > { %1029 = shalt.err (!%p1026_p6)
}
  0x26   : > { %s1162_s11 = smov 64   ;;  %s1163_s12 = smov 4  }
  0x27   : > { %914 = dma.hbm_to_vmem [thread:$0]  (!%p1251_p11), %s1489_s1, 256, %s1244_s25, [#allocation6], %s1162_s11, %s1162_s11, %s1163_s12  }
  0x28   : > { %s1030_s27 = scalar_lea.hbm %s1490_s2, 256 }
  0x29   : > { %p1031_p1 = scmp.ne.s32.totalorder %s1490_s2, %s1030_s27  ;;  %p1037_p10 = scmp.lt.u32.totalorder %s1030_s27, %s1490_s2 }
  0x2b   : > { %p1033_p2 = pnand %p1031_p1, %p1004_p13 }
  0x2d   : > { %p1034_p6 = pneg %p1033_p2 }
  0x2f   : > { %p1039_p3 = pnand %p1037_p10, %p1034_p6 }
  0x31   : > { %1042 = shalt.err (!%p1039_p3)
}
  0x32   : > { %s1043_s25 = scalar_lea.vmem %s1255_s28, 256  ;;  %p1051_p12 = scmp.lt.s32.totalorder %s1255_s28, %s1255_s28 }
  0x33   : > { %p1044_p5 = scmp.ne.s32.totalorder %s1255_s28, %s1043_s25  ;;  %p1052_p0 = scmp.lt.s32.totalorder %s1043_s25, %s1043_s25 }
  0x35   : > { %p1046_p7 = pnand %p1044_p5, %p1004_p13  ;;  %p1053_p1 = por %p1052_p0, %p1051_p12 }
  0x37   : > { %p1047_p9 = pneg %p1046_p7 }
  0x39   : > { %p1054_p2 = pnand %p1053_p1, %p1047_p9 }
  0x3b   : > { %1057 = shalt.err (!%p1054_p2)
}
  0x3c   : > { %917 = dma.hbm_to_vmem [thread:$0]  (!%p1251_p11), %s1490_s2, 256, %s1255_s28, [#allocation6], %s1162_s11, %s1162_s11, %s1163_s12  }
  0x3d   : > { %s1316_s26 = sadd.s32 1, %s1158_s18   ;;  %s28_s9 = sadd.s32 1, %s1154_s17 }
  0x3e   : > { %s25_s10 = ssub.s32 %s1158_s18, %s1316_s26  ;;  %p35_p13 = scmp.ne.s32.totalorder %s1154_s17, %s1150_s16 }
  0x3f   : > { %p26_p6 = scmp.eq.s32.totalorder %s25_s10, 0  ;;  %p36_p10 = scmp.eq.s32.totalorder %s1158_s18, 0 }
  0x40   : > { %p1500_p3 = scmp.eq.s32.totalorder %s1221_s19, 1  ;;  %p928_p7 = scmp.lt.s32.totalorder %s1158_s18, 2 }
  0x41   : > { %s1332_s14 = scalar_select %p26_p6, %s1154_s17, %s28_s9  }
  0x42   : > { %p1326_p5 = por %p1500_p3, %p35_p13  ;;  %p37_p9 = por %p36_p10, %p35_p13 }
  0x43   : > { %s183_s20 = sand.u32 1, %s1154_s17   ;;  %s838_s28 = sshll.u32 %s1158_s18, 7 }
  0x44   : > { %s1501_s13 = scalar_select %p1326_p5, 1, 0 }
  0x45   : > { %s812_s24 = sshll.u32 %s183_s20, 3  ;;  %s1339_s30 = scalar_lea.hbm %s1488_s0, %s838_s28 }
  0x46   : > { %s187_s5 = scalar_lea.vmem [#allocation2], %s812_s24  ;;  %p1343_p11 = pnand %p928_p7, %p37_p9 }
  0x47   : > { %s194_s6 = sshll.u32 %s187_s5, 4  ;;  %s1347_s7 = scalar_lea.sflag [#allocation3], %s183_s20  ;;  %s1341_s6 = int_to_ptr.vmem [resolvable:$true] %s194_s6 }
  0x48   : > { %s1058_s8 = scalar_lea.hbm %s1339_s30, 128  ;;  %p1060_p0 = pneg %p1343_p11 }
  0x49   : > { %p1059_p12 = scmp.ne.s32.totalorder %s1339_s30, %s1058_s8  ;;  %s1063_s24 = scalar_lea.hbm %s1488_s0, 256 }
  0x4a   : > { %p1064_p13 = scmp.lt.u32.totalorder %s1339_s30, %s1488_s0  ;;  %p1065_p6 = scmp.lt.u32.totalorder %s1063_s24, %s1058_s8 }
  0x4b   : > { %p1061_p1 = pnand %p1060_p0, %p1059_p12  ;;  %p1067_p3 = scmp.lt.u32.totalorder %s1058_s8, %s1339_s30 }
  0x4c   : > { %p1066_p10 = por %p1065_p6, %p1064_p13 }
  0x4d   : > { %p1062_p2 = pneg %p1061_p1 }
  0x4e   : > { %p1068_p7 = por %p1067_p3, %p1066_p10 }
  0x50   : > { %p1069_p9 = pnand %p1068_p7, %p1062_p2 }
  0x52   : > { %1072 = shalt.err (!%p1069_p9)
}
  0x53   : > { %s1073_s20 = scalar_lea.vmem %s1341_s6, 128  ;;  %s1164_s29 = smov [#allocation2]  }
  0x54   : > { %p1074_p12 = scmp.ne.s32.totalorder %s1341_s6, %s1073_s20  ;;  %s1078_s5 = sshll.u32 %s1164_s29, 4  ;;  %s1079_s5 = int_to_ptr.vmem [resolvable:$false] %s1078_s5 }
  0x55   : > { %s1080_s9 = scalar_lea.vmem %s1079_s5, 256  ;;  %p1081_p4 = scmp.lt.s32.totalorder %s1341_s6, %s1079_s5 }
  0x56   : > { %p1076_p1 = pnand %p1074_p12, %p1060_p0  ;;  %p1082_p13 = scmp.lt.s32.totalorder %s1080_s9, %s1073_s20 }
  0x58   : > { %p1077_p5 = pneg %p1076_p1  ;;  %p1083_p6 = por %p1082_p13, %p1081_p4 }
  0x5a   : > { %p1084_p10 = pnand %p1083_p6, %p1077_p5 }
  0x5c   : > { %1087 = shalt.err (!%p1084_p10)
}
  0x5d   : > { %921 = dma.hbm_to_vmem [thread:$0]  (!%p1343_p11), %s1339_s30, 128, %s1341_s6, %s1347_s7, %s1162_s11, %s1162_s11, %s1163_s12  }
  0x5e   : > { %206 = sbr.rel (%p1240_p8) target bundleno = 1290 (0x50a), region = 36  ;;  %s1381_s8 = sand.u32 (!%p1240_p8), 1, %s1150_s16  }
  0x5f   : > { %s816_s10 = sshll.u32 (!%p1240_p8), %s1381_s8, 3  ;;  %s209_s24 = scalar_lea.sflag (!%p1240_p8), [#allocation3], %s1381_s8 }
  0x60   : > { %s212_s28 = scalar_lea.vmem (!%p1240_p8), [#allocation2], %s816_s10  ;;  %p1503_p4 = scmp.ne.s32.totalorder (!%p1240_p8), %s1496_s21, 0 }
  0x65   : > { %1133 = dma.done.wait (%p1503_p4), %s209_s24, 128  }
  0x66   : > { %1135 = vsyncadd (%p1503_p4), %s209_s24, 4294967168  ;;  %p1504_p5 = scmp.eq.s32.totalorder %s1221_s19, 0 }
  0x68   : > { %1137 = dma.done.wait (%p1504_p5), [#allocation6], 512   ;;  %p1505_p11 = pmov %p1504_p5 }
  0x69   : > { %v1165_v0 = vmov 0.0   ;;  %vm1166_vm0 = vmmov 0   ;;  %v977_v1 = vld [vmem:[#allocation5] sm:$0xff]   ;;  %v978_v2 = vld [vmem:[#allocation5 + $0x8] sm:$0xff]   ;;  %v979_v3 = vld [vmem:[%s212_s28] sm:$0xff]   ;;  %vm269_vm1 = vcmask 261120  }
  0x6a   : > { %1139 = vsyncadd (%p1505_p11), [#allocation6], 4294966784  ;;  %855 = vmatprep.subr.bf16.mxu0 %v1165_v0  ;;  %859 = vmatprep.mubr.msk.bf16.mxu0 %vm1166_vm0, %v1165_v0  ;;  %s1167_s21 = smov 112   ;;  %s1168_s23 = smov 96   ;;  %vm318_vm2 = vcmask 130048   ;;  %v980_v50 = vld [vmem:[#allocation7] sm:$0xff]  }
  0x6b   : > { %863 = vmatprep.subr.bf16.mxu1 %v1165_v0  ;;  %865 = vmatprep.mubr.msk.bf16.mxu1 %vm1166_vm0, %v1165_v0  ;;  %s1169_s11 = smov 80   ;;  %s1170_s12 = smov 48   ;;  %v981_v51 = vld [vmem:[#allocation7 + $0x8] sm:$0xff]  }
  0x6c   : > { %856 = vmatpush3.bf16.msra.mxu0 %v977_v1  ;;  %s1171_s30 = smov 64   ;;  %s819_s6 = sshll.u32 %s1381_s8, 4 }
  0x6d   : > { %857 = vmatprep.subr.bf16.mxu0 %v1165_v0  ;;  %s839_s27 = sshll.u32 %s1221_s19, 8  ;;  %s244_s20 = scalar_lea.vmem [#allocation8], %s819_s6 }
  0x6e   : > { %s715_s29 = sshll.u32 %s244_s20, 4  ;;  %s1440_s10 = scalar_lea.hbm %s1492_s4, %s839_s27  ;;  %s1442_s29 = int_to_ptr.vmem [resolvable:$true] %s715_s29 }
  0x6f   : > { %s702_s19 = scalar_lea.sflag [#allocation4], %s1381_s8  ;;  %s1088_s24 = scalar_lea.vmem %s1442_s29, 256 }
  0x70   : > { %858 = vmatpush3.bf16.msra.mxu0 %v978_v2  ;;  %p1089_p8 = scmp.ne.s32.totalorder %s1442_s29, %s1088_s24  ;;  %p1506_p0 = scmp.ne.s32.totalorder %s1501_s13, 0 }
  0x71   : > { %869 = vmatprep.subr.bf16.mxu0 %v1165_v0  ;;  %s1172_s28 = smov [#allocation8]  }
  0x72   : > { %p1090_p2 = pnand %p1089_p8, %p1506_p0 }
  0x73   : > { %860 = vmatmul.mubr.msk.bf16.vlgmr.msra.gmra.mrb[0].mxu0 %vm269_vm1, %v979_v3 }
  0x74   : > { %871 = vmatprep.mubr.msk.bf16.mxu0 %vm1166_vm0, %v1165_v0  ;;  %p1091_p3 = pneg %p1090_p2 }
 0x146   : > { %v307_v4 = vpop.f32.mrb[0].mxu0 }
 0x147   : > { %v861_v5 = vpop.f32.mrb[1].mxu0 }
 0x148   : > { %v310_v6 = vpop.f32.mrb[2].mxu0 }
 0x149   : > { %v314_v7 = vpack.c.bf16 %v310_v6, %v307_v4  ;;  %v862_v8 = vpop.f32.mrb[3].mxu0 }
 0x14b   : > { %452 = vrot.lane.b32.xlu1 %v314_v7, %s1167_s21  ;;  %316 = vrot.lane.b32.xlu0 %v314_v7, %s1168_s23  ;;  %s1092_s21 = sshll.u32 %s1172_s28, 4  ;;  %s1093_s21 = int_to_ptr.vmem [resolvable:$false] %s1092_s21 }
 0x14c   : > { %s1094_s23 = scalar_lea.vmem %s1093_s21, 512  ;;  %p1095_p7 = scmp.lt.s32.totalorder %s1442_s29, %s1093_s21 }
 0x14d   : > { %p1096_p9 = scmp.lt.s32.totalorder %s1094_s23, %s1088_s24 }
 0x14f   : > { %454 = vrot.lane.b32.xlu0 %v314_v7, %s1169_s11  ;;  %p1097_p12 = por %p1096_p9, %p1095_p7 }
 0x151   : > { %p1098_p1 = pnand %p1097_p12, %p1091_p3 }
 0x1bd   : > { %v317_v9 = vpop.permute.xlu0 %316  ;;  %v453_v13 = vpop.permute.xlu1 %452 }
 0x1be   : > { %v323_v10 = vsel %vm318_vm2, %v317_v9, 0 }
 0x1bf   : > { %864 = vmatpush3.bf16.xpose.msra.mxu1 %v323_v10 }
 0x1c0   : > { %875 = vmatprep.subr.bf16.mxu1 %v1165_v0 }
 0x1c1   : > { %v455_v11 = vpop.permute.xlu0 %454 }
 0x1c2   : > { %v460_v12 = vsel %vm318_vm2, %v455_v11, 0 }
 0x1c6   : > { %866 = vmatmul.mubr.msk.bf16.vlgmr.msra.gmra.mrb[0].mxu1 %vm318_vm2, %v314_v7 }
 0x1c7   : > { %876 = vmatpush3.bf16.xpose.msra.mxu1 %v460_v12  ;;  %877 = vmatprep.mubr.msk.bf16.mxu1 %vm1166_vm0, %v1165_v0 }
 0x1c8   : > { %887 = vmatprep.subr.bf16.mxu1 %v1165_v0 }
 0x1ce   : > { %878 = vmatmul.mubr.msk.bf16.vlgmr.msra.gmra.mrb[4].mxu1 %vm318_vm2, %v453_v13 }
 0x1cf   : > { %889 = vmatprep.mubr.msk.bf16.mxu1 %vm1166_vm0, %v1165_v0  ;;  %888 = vmatpush3.bf16.msra.mxu1 %v981_v51 }
 0x299   : > { %v359_v14 = vpop.f32.mrb[0].mxu1 }
 0x29a   : > { %v867_v15 = vpop.f32.mrb[1].mxu1  ;;  %v366_v16 = vsel %vm318_vm2, %v359_v14, -inf }
 0x29b   : > { %367 = vmax.xlane.f32.xlu1 %v366_v16  ;;  %v362_v17 = vpop.f32.mrb[2].mxu1 }
 0x29c   : > { %v868_v18 = vpop.f32.mrb[3].mxu1  ;;  %v369_v19 = vsel %vm318_vm2, %v362_v17, -inf }
 0x29d   : > { %370 = vmax.xlane.f32.xlu0 %v369_v19 }
 0x2a1   : > { %v496_v20 = vpop.f32.mrb[4].mxu1 }
 0x2a2   : > { %v879_v21 = vpop.f32.mrb[5].mxu1  ;;  %v503_v22 = vsel %vm318_vm2, %v496_v20, -inf }
 0x2a3   : > { %504 = vmax.xlane.f32.xlu0 %v503_v22  ;;  %v499_v23 = vpop.f32.mrb[6].mxu1 }
 0x2a4   : > { %v880_v24 = vpop.f32.mrb[7].mxu1  ;;  %v506_v25 = vsel %vm318_vm2, %v499_v23, -inf }
 0x2a5   : > { %507 = vmax.xlane.f32.xlu1 %v506_v25 }
 0x2b6   : > { %533 = vrot.lane.b32.xlu1 %v314_v7, %s1170_s12 }
 0x2b9   : > { %396 = vrot.lane.b32.xlu0 %v314_v7, %s1171_s30 }
 0x328   : > { %v368_v26 = vpop.xlane.xlu1 %367 }
 0x329   : > { %v378_v28 = vsub.f32 %v359_v14, %v368_v26  ;;  %v372_v52 = vsub.f32 -inf, %v368_v26 }
 0x32a   : > { %v371_v27 = vpop.xlane.xlu0 %370 }
 0x32b   : > { %v379_v29 = vsub.f32 %v362_v17, %v371_v27  ;;  %v373_v53 = vsub.f32 -inf, %v371_v27  ;;  %v374_v54 = vmul.f32 1.442695, %v372_v52 }
 0x32d   : > { %v380_v30 = vpack.c.bf16 %v379_v29, %v378_v28  ;;  %v376_v55 = vmul.f32 1.442695, %v373_v53 }
 0x32f   : > { %v382_v31 = vmul.bf16 1069105081, %v380_v30 }
 0x330   : > { %v505_v32 = vpop.xlane.xlu0 %504 }
 0x331   : > { %982 = vpow.bf16 %v382_v31  ;;  %v515_v34 = vsub.f32 %v496_v20, %v505_v32  ;;  %v509_v56 = vsub.f32 -inf, %v505_v32 }
 0x332   : > { %v508_v33 = vpop.xlane.xlu1 %507 }
 0x333   : > { %v516_v35 = vsub.f32 %v499_v23, %v508_v33  ;;  %v510_v57 = vsub.f32 -inf, %v508_v33  ;;  %v511_v58 = vmul.f32 1.442695, %v509_v56 }
 0x334   : > { %v397_v36 = vpop.permute.xlu0 %396 }
 0x335   : > { %v517_v37 = vpack.c.bf16 %v516_v35, %v515_v34  ;;  %870 = vmatpush3.bf16.msra.mxu0 %v397_v36  ;;  %v513_v59 = vmul.f32 1.442695, %v510_v57 }
 0x336   : > { %881 = vmatprep.subr.bf16.mxu0 %v1165_v0  ;;  %v534_v40 = vpop.permute.xlu1 %533 }
 0x337   : > { %v519_v38 = vmul.bf16 1069105081, %v517_v37 }
 0x339   : > { %984 = vpow.bf16 %v519_v38 }
 0x33a   : > { %986 = vpow2.f32 %v374_v54 }
 0x33b   : > { %988 = vpow2.f32 %v376_v55 }
 0x33c   : > { %v983_v39 = vpop.eup %982  ;;  %990 = vpow2.f32 %v511_v58 }
 0x33d   : > { %872 = vmatmul.mubr.msk.bf16.vlgmr.msra.gmra.mrb[4].mxu0 %vm318_vm2, %v983_v39  ;;  %v387_v41 = vunpack.c.h.bf16 %v983_v39  ;;  %v386_v42 = vunpack.c.l.bf16 %v983_v39  ;;  %992 = vpow2.f32 %v513_v59  ;;  %v832_v39 = vld [vmem:[%s1491_s3] ss:$0 sm:$0xff] }
 0x33e   : > { %882 = vmatpush3.bf16.msra.mxu0 %v534_v40  ;;  %883 = vmatprep.mubr.msk.bf16.mxu0 %vm1166_vm0, %v1165_v0 }
 0x33f   : > { %v391_v43 = vsel %vm318_vm2, %v387_v41, 0.0  ;;  %v388_v44 = vsel %vm318_vm2, %v386_v42, 0.0  ;;  %893 = vmatprep.subr.bf16.mxu0 %v1165_v0 }
 0x340   : > { %392 = vadd.xlane.f32.xlu0 %v391_v43  ;;  %389 = vadd.xlane.f32.xlu1 %v388_v44 }
 0x344   : > { %v985_v45 = vpop.eup %984 }
 0x345   : > { %884 = vmatmul.mubr.msk.bf16.vlgmr.msra.gmra.mrb[8].mxu0 %vm318_vm2, %v985_v45  ;;  %v524_v46 = vunpack.c.h.bf16 %v985_v45  ;;  %v523_v47 = vunpack.c.l.bf16 %v985_v45  ;;  %v987_v60 = vpop.eup %986 }
 0x346   : > { %895 = vmatprep.mubr.msk.bf16.mxu0 %vm1166_vm0, %v1165_v0  ;;  %894 = vmatpush3.bf16.msra.mxu0 %v980_v50  ;;  %v989_v61 = vpop.eup %988  ;;  %v384_v63 = vmul.f32 0.0, %v987_v60 }
 0x347   : > { %v528_v48 = vsel %vm318_vm2, %v524_v46, 0.0  ;;  %v525_v49 = vsel %vm318_vm2, %v523_v47, 0.0  ;;  %v385_v2 = vmul.f32 0.0, %v989_v61  ;;  %v991_v4 = vpop.eup %990 }
 0x348   : > { %529 = vadd.xlane.f32.xlu1 %v528_v48  ;;  %526 = vadd.xlane.f32.xlu0 %v525_v49  ;;  %v993_v5 = vpop.eup %992  ;;  %v521_v7 = vmul.f32 0.0, %v991_v4 }
 0x349   : > { %v522_v9 = vmul.f32 0.0, %v993_v5 }
 0x3cd   : > { %v390_v62 = vpop.xlane.xlu1 %389  ;;  %v393_v0 = vpop.xlane.xlu0 %392 }
 0x3ce   : > { %v394_v1 = vadd.f32 %v390_v62, %v384_v63  ;;  %v395_v3 = vadd.f32 %v393_v0, %v385_v2 }
 0x3d0   : > { %994 = vrcp.f32 %v394_v1 }
 0x3d1   : > { %996 = vrcp.f32 %v395_v3 }
 0x3d5   : > { %v527_v6 = vpop.xlane.xlu0 %526  ;;  %v530_v8 = vpop.xlane.xlu1 %529 }
 0x3d6   : > { %v531_v10 = vadd.f32 %v527_v6, %v521_v7  ;;  %v532_v11 = vadd.f32 %v530_v8, %v522_v9 }
 0x3d8   : > { %998 = vrcp.f32 %v531_v10 }
 0x3d9   : > { %1000 = vrcp.f32 %v532_v11 }
 0x3da   : > { %v995_v15 = vpop.eup %994 }
 0x3db   : > { %v997_v20 = vpop.eup %996 }
 0x3e2   : > { %v999_v26 = vpop.eup %998 }
 0x3e3   : > { %v1001_v31 = vpop.eup %1000 }
 0x410   : > { %v436_v12 = vpop.f32.mrb[4].mxu0 }
 0x411   : > { %v443_v13 = vadd.f32 %v436_v12, %v384_v63  ;;  %v873_v14 = vpop.f32.mrb[5].mxu0 }
 0x412   : > { %v439_v16 = vpop.f32.mrb[6].mxu0 }
 0x413   : > { %v447_v17 = vmul.f32 %v995_v15, %v443_v13  ;;  %v444_v18 = vadd.f32 %v439_v16, %v385_v2  ;;  %v874_v19 = vpop.f32.mrb[7].mxu0 }
 0x415   : > { %v448_v21 = vmul.f32 %v997_v20, %v444_v18 }
 0x417   : > { %v449_v22 = vpack.c.bf16 %v448_v21, %v447_v17 }
 0x418   : > { %v573_v23 = vpop.f32.mrb[8].mxu0 }
 0x419   : > { %v580_v24 = vadd.f32 %v573_v23, %v521_v7  ;;  %v885_v25 = vpop.f32.mrb[9].mxu0  ;;  %896 = vmatmul.mubr.msk.bf16.vlgmr.msra.gmra.mrb[12].mxu0 %vm318_vm2, %v449_v22 }
 0x41a   : > { %v576_v27 = vpop.f32.mrb[10].mxu0 }
 0x41b   : > { %v584_v28 = vmul.f32 %v999_v26, %v580_v24  ;;  %v581_v29 = vadd.f32 %v576_v27, %v522_v9  ;;  %v886_v30 = vpop.f32.mrb[11].mxu0 }
 0x41d   : > { %v585_v32 = vmul.f32 %v1001_v31, %v581_v29 }
 0x41f   : > { %v586_v33 = vpack.c.bf16 %v585_v32, %v584_v28 }
 0x421   : > { %890 = vmatmul.mubr.msk.bf16.vlgmr.msra.gmra.mrb[8].mxu1 %vm318_vm2, %v586_v33 }
 0x4ec   : > { %v683_v34 = vpop.f32.mrb[12].mxu0 }
 0x4ed   : > { %v897_v35 = vpop.f32.mrb[13].mxu0 }
 0x4ee   : > { %v686_v36 = vpop.f32.mrb[14].mxu0 }
 0x4ef   : > { %v898_v37 = vpop.f32.mrb[15].mxu0 }
 0x4f4   : > { %v633_v38 = vpop.f32.mrb[8].mxu1 }
 0x4f5   : > { %v684_v40 = vadd.f32 %v683_v34, %v633_v38  ;;  %v891_v41 = vpop.f32.mrb[9].mxu1 }
 0x4f6   : > { %v636_v42 = vpop.f32.mrb[10].mxu1 }
 0x4f7   : > { %v697_v43 = vadd.f32 %v832_v39, %v684_v40  ;;  %v687_v44 = vadd.f32 %v686_v36, %v636_v42  ;;  %v892_v45 = vpop.f32.mrb[11].mxu1 }
 0x4f9   : > { %699 = vst.msk [vmem:[%s244_s20] sm:$0xff] %vm269_vm1, %v697_v43  ;;  %v698_v46 = vadd.f32 %v832_v39, %v687_v44 }
 0x4fb   : > { %700 = vst.msk [vmem:[%s244_s20 + $0x8] sm:$0xff] %vm269_vm1, %v698_v46 }
 0x4fc   : > { %1101 = shalt.err (!%p1098_p1)
}
 0x4fd   : > { %s1102_s11 = scalar_lea.hbm %s1440_s10, 256  ;;  %s1106_s6 = scalar_lea.hbm %s1492_s4, 512 }
 0x4fe   : > { %p1103_p13 = scmp.ne.s32.totalorder %s1440_s10, %s1102_s11  ;;  %p1107_p4 = scmp.lt.u32.totalorder %s1440_s10, %s1492_s4 }
 0x4ff   : > { %p1108_p5 = scmp.lt.u32.totalorder %s1106_s6, %s1102_s11  ;;  %p1110_p8 = scmp.lt.u32.totalorder %s1102_s11, %s1440_s10 }
 0x500   : > { %p1104_p6 = pnand %p1103_p13, %p1506_p0 }
 0x501   : > { %p1109_p11 = por %p1108_p5, %p1107_p4 }
 0x502   : > { %p1105_p10 = pneg %p1104_p6 }
 0x503   : > { %p1111_p2 = por %p1110_p8, %p1109_p11 }
 0x505   : > { %p1112_p3 = pnand %p1111_p2, %p1105_p10 }
 0x507   : > { %1115 = shalt.err (!%p1112_p3)
}
 0x508   : > { %s1173_s27 = smov 128   ;;  %s1174_s20 = smov 8  }
 0x509   : > { %909 = dma.vmem_to_hbm [thread:$0]  (%p1506_p0), %s1442_s29, 256, %s1440_s10, %s702_s19, %s1173_s27, %s1173_s27, %s1174_s20  }
 0x50a PF: > { %s730_s5 = sand.u32 1, %s1146_s15   ;;  %p1507_p7 = scmp.ne.s32.totalorder %s1497_s22, 0 }
 0x50b   : > { %p1508_p9 = scmp.ge.s32.totalorder %s1158_s18, 2  ;;  %s731_s9 = scalar_lea.sflag [#allocation4], %s730_s5 }
 0x50d   : > { %p923_p12 = pnand %p1508_p9, %p1507_p7 }
 0x50f   : > { %1141 = dma.done.wait (!%p923_p12), %s731_s9, 256  }
 0x510   : > { %1143 = vsyncadd (!%p923_p12), %s731_s9, 4294967040  ;;  %p18_p1 = scmp.ge.s32.totalorder %s1316_s26, 4   ;;  %s1509_s15 = smov %s1150_s16 }
 0x511   : > { %s1510_s16 = smov %s1154_s17  ;;  %s1511_s17 = smov %s1332_s14 }
 0x512   : > { %s1512_s18 = smov %s1316_s26  ;;  %20 = sbr.rel (!%p18_p1) target bundleno = 6 (0x6), region = 90 }
 0x519   :  { %736 = vsyncpa [#allocation3], 1 }
 0x51a   :  { %738 = vsyncpa [#allocation3 + $0x1], 1 }
 0x51b   :  { %739 = vsyncpa [#allocation6], 1 }
 0x51c   :  { %740 = vsyncpa [#allocation4], 1 }
 0x51d   :  { %742 = vsyncpa [#allocation4 + $0x1], 1 }

</bundles_post_ra>
